<compile_context>
chip_gen: v7x
topology: tpu7x:2x2x1
jax: 0.10.0
libtpu: 0.0.40
codegen_flags: <defaults>
</compile_context>

<pallas_src>
import jax
import jax.numpy as jnp
from jax.experimental import pallas as pl
from jax.experimental.pallas import tpu as pltpu

BN_EPS = 1e-5
LANE = 128


def _round_up(x, m):
    return (x + m - 1) // m * m


def _pad_axis(x, target, axis):
    pad = target - x.shape[axis]
    if pad <= 0:
        return x
    widths = [(0, 0)] * x.ndim
    widths[axis] = (0, pad)
    return jnp.pad(x, widths)


# ---------------------------------------------------------------------------
# Fused Pallas kernel: all GIN layers + BatchNorm + SumPooling
# ---------------------------------------------------------------------------
def gin_encoder_kernel(a_ref, seg_ref, feat_ref, w1f_ref, w1r_ref, w2_ref,
                       vec_ref, local_ref, global_ref):
    n_layer = w2_ref.shape[0]
    hp = w2_ref.shape[2]

    a_bf = a_ref[...]                          # [N, N]  bf16, A + I (exact)
    seg = seg_ref[...].astype(jnp.float32)     # [G, N]  exact upcast
    x = feat_ref[...]                          # [N, Dp] f32
    inv_n = 1.0 / x.shape[0]

    for l in range(n_layer):                   # static unroll (n_layer small)
        w1 = w1f_ref[...] if l == 0 else w1r_ref[l - 1]   # [Dp|Hp, Hp] f32
        w2 = w2_ref[l]                                    # [Hp, Hp]    f32
        vec = vec_ref[l]                                  # [4, Hp]
        b1, b2, gamma, beta = vec[0:1], vec[1:2], vec[2:3], vec[3:4]

        # GIN aggregation (eps = 0); self-term already folded into A_hat.
        # bf16 x bf16 MXU matmul with f32 accumulation.
        pre = jnp.dot(a_bf, x.astype(jnp.bfloat16),
                      preferred_element_type=jnp.float32)

        # apply_func: Linear -> ReLU -> Linear, then the outer ReLU.
        z1 = jnp.dot(pre, w1, preferred_element_type=jnp.float32) + b1
        z1 = jnp.maximum(z1, 0.0)
        z2 = jnp.dot(z1, w2, preferred_element_type=jnp.float32) + b2
        x = jnp.maximum(z2, 0.0)

        # BatchNorm1d, training-mode biased variance, one pass over x.
        s1 = jnp.sum(x, axis=0, keepdims=True)
        s2 = jnp.sum(x * x, axis=0, keepdims=True)
        mean = s1 * inv_n
        var = jnp.maximum(s2 * inv_n - mean * mean, 0.0)
        inv_std = jax.lax.rsqrt(var + BN_EPS)
        scale = gamma * inv_std                # [1, Hp] cheap row-vector math
        shift = beta - mean * scale
        x = x * scale + shift                  # 2 VPU ops over [N, Hp]

        # Lane-dense writes into this layer's slice of the concat slabs.
        local_ref[:, l * hp:(l + 1) * hp] = x
        global_ref[:, l * hp:(l + 1) * hp] = jnp.dot(
            seg, x, preferred_element_type=jnp.float32)


@jax.jit
def _fused_call(a_hat, seg, feat, w1f, w1r, w2, vec):
    n_nodes = feat.shape[0]
    n_graphs = seg.shape[0]
    n_layer, _, hp = w2.shape
    vspec = pl.BlockSpec(memory_space=pltpu.MemorySpace.VMEM)
    return pl.pallas_call(
        gin_encoder_kernel,
        out_shape=(
            jax.ShapeDtypeStruct((n_nodes, n_layer * hp), jnp.float32),
            jax.ShapeDtypeStruct((n_graphs, n_layer * hp), jnp.float32),
        ),
        in_specs=[vspec] * 7,
        out_specs=(vspec, vspec),
        compiler_params=pltpu.CompilerParams(
            vmem_limit_bytes=32 * 1024 * 1024),
    )(a_hat, seg, feat, w1f, w1r, w2, vec)


# ---------------------------------------------------------------------------
# Wrapper: padding / packing (layout plumbing only)
# ---------------------------------------------------------------------------
def gin_encoder_forward(adj, seg, feat, params):
    """Full GINEncoder forward.

    adj:  [N, N]  dense adjacency (float32)
    seg:  [G, N]  one-hot graph membership (float32)
    feat: [N, in_dim] node features
    params: list of per-layer dicts (w1, b1, w2, b2, gamma, beta)
    Returns (global_emb [G, n_layer*hid], local_emb [N, n_layer*hid]).
    """
    n_nodes, in_dim = feat.shape
    n_layer = len(params)
    hid = params[0]["w2"].shape[1]
    dp = _round_up(in_dim, LANE)
    hp = _round_up(hid, LANE)

    # Fold GIN self-term (eps=0) into the adjacency once; bf16 is exact here.
    a_hat = (adj + jnp.eye(n_nodes, dtype=adj.dtype)).astype(jnp.bfloat16)
    seg_b = seg.astype(jnp.bfloat16)

    feat_p = _pad_axis(feat.astype(jnp.float32), dp, 1)

    # Layer-0 Linear has a different input width -> passed separately.
    w1f = _pad_axis(_pad_axis(params[0]["w1"], dp, 0), hp, 1)
    if n_layer > 1:
        w1r = jnp.stack([_pad_axis(_pad_axis(p["w1"], hp, 0), hp, 1)
                         for p in params[1:]])
    else:
        w1r = jnp.zeros((1, hp, hp), jnp.float32)  # dummy, never read
    w2 = jnp.stack([_pad_axis(_pad_axis(p["w2"], hp, 0), hp, 1)
                    for p in params])
    # Pack b1, b2, gamma, beta into one [L, 4, Hp] slab (one DMA).
    vec = jnp.stack([
        jnp.concatenate([_pad_axis(p["b1"], hp, 1),
                         _pad_axis(p["b2"], hp, 1),
                         _pad_axis(p["gamma"], hp, 1),
                         _pad_axis(p["beta"], hp, 1)], axis=0)
        for p in params])

    local_p, global_p = _fused_call(a_hat, seg_b, feat_p, w1f, w1r, w2, vec)

    # Strip the lane padding per layer and re-concat (plain XLA slicing).
    local_emb = jnp.concatenate(
        [local_p[:, l * hp: l * hp + hid] for l in range(n_layer)], axis=1)
    global_emb = jnp.concatenate(
        [global_p[:, l * hp: l * hp + hid] for l in range(n_layer)], axis=1)
    return global_emb, local_emb


# ---------------------------------------------------------------------------
# Pure-JAX reference (for a correctness check)
# ---------------------------------------------------------------------------
def reference_forward(adj, seg, feat, params):
    a_hat = adj + jnp.eye(adj.shape[0], dtype=adj.dtype)
    x = feat
    xs = []
    for p in params:
        pre = a_hat @ x
        z1 = jax.nn.relu(pre @ p["w1"] + p["b1"])
        z2 = z1 @ p["w2"] + p["b2"]
        x = jax.nn.relu(z2)
        mean = jnp.mean(x, axis=0, keepdims=True)
        var = jnp.mean((x - mean) ** 2, axis=0, keepdims=True)
        x = p["gamma"] * (x - mean) * jax.lax.rsqrt(var + BN_EPS) + p["beta"]
        xs.append(x)
    local = jnp.concatenate(xs, axis=1)
    return seg @ local, local


# ---------------------------------------------------------------------------
# Deterministic parameter init (PyTorch-style uniform bounds)
# ---------------------------------------------------------------------------
def init_params(key, in_dim, hid_dim, n_layer):
    params = []
    for i in range(n_layer):
        n_in = in_dim if i == 0 else hid_dim
        key, k1, k2, k3, k4 = jax.random.split(key, 5)
        bnd1 = 1.0 / jnp.sqrt(n_in)
        bnd2 = 1.0 / jnp.sqrt(hid_dim)
        params.append({
            # weights stored [in, out] so the kernel computes x @ W
            "w1": jax.random.uniform(k1, (n_in, hid_dim), jnp.float32, -bnd1, bnd1),
            "b1": jax.random.uniform(k2, (1, hid_dim), jnp.float32, -bnd1, bnd1),
            "w2": jax.random.uniform(k3, (hid_dim, hid_dim), jnp.float32, -bnd2, bnd2),
            "b2": jax.random.uniform(k4, (1, hid_dim), jnp.float32, -bnd2, bnd2),
            "gamma": jnp.ones((1, hid_dim), jnp.float32),
            "beta": jnp.zeros((1, hid_dim), jnp.float32),
        })
    return params


# ---------------------------------------------------------------------------
# Main
# ---------------------------------------------------------------------------
if __name__ == "__main__":
    in_dim, hid_dim, n_layer = 16, 32, 3
    nodes_per_graph, n_graphs = 16, 2
    n_nodes = nodes_per_graph * n_graphs  # 32

    key = jax.random.PRNGKey(0)
    key, k_feat, k_adj = jax.random.split(key, 3)

    # node features
    feat = jax.random.normal(k_feat, (n_nodes, in_dim), jnp.float32)

    # block-diagonal symmetric adjacency (2 disjoint graphs)
    blocks = []
    for g in range(n_graphs):
        k_adj, kb = jax.random.split(k_adj)
        m = jax.random.bernoulli(kb, 0.3, (nodes_per_graph, nodes_per_graph))
        m = jnp.triu(m, 1)
        blocks.append((m | m.T).astype(jnp.float32))
    adj = jax.scipy.linalg.block_diag(*blocks).astype(jnp.float32)

    # one-hot graph membership [G, N]
    graph_id = jnp.repeat(jnp.arange(n_graphs), nodes_per_graph)
    seg = jax.nn.one_hot(graph_id, n_graphs, dtype=jnp.float32).T

    params = init_params(key, in_dim, hid_dim, n_layer)

    global_emb, local_emb = gin_encoder_forward(adj, seg, feat, params)
    jax.block_until_ready((global_emb, local_emb))

    assert global_emb.shape == (n_graphs, n_layer * hid_dim)
    assert local_emb.shape == (n_nodes, n_layer * hid_dim)

    # correctness check against a pure-JAX reference
    g_ref, l_ref = reference_forward(adj, seg, feat, params)
    assert jnp.allclose(local_emb, l_ref, rtol=5e-2, atol=5e-2)
    assert jnp.allclose(global_emb, g_ref, rtol=5e-2, atol=5e-2)

    print("KERNEL_OK")
</pallas_src>

<mosaic_0001>
module attributes {stable_mosaic.version = 11 : i64} {
  func.func @gin_encoder_kernel(%arg0: memref<32x32xbf16, #tpu.memory_space<vmem>>, %arg1: memref<2x32xbf16, #tpu.memory_space<vmem>>, %arg2: memref<32x128xf32, #tpu.memory_space<vmem>>, %arg3: memref<128x128xf32, #tpu.memory_space<vmem>>, %arg4: memref<2x128x128xf32, #tpu.memory_space<vmem>>, %arg5: memref<3x128x128xf32, #tpu.memory_space<vmem>>, %arg6: memref<3x4x128xf32, #tpu.memory_space<vmem>>, %arg7: memref<32x384xf32, #tpu.memory_space<vmem>>, %arg8: memref<2x384xf32, #tpu.memory_space<vmem>>) attributes {dimension_semantics = [], scalar_prefetch = 0 : i64, scratch_operands = 0 : i64, tpu.core_type = #tpu.core_type<tc>} {
    %c0 = arith.constant 0 : index
    %c0_0 = arith.constant 0 : index
    %0 = vector.load %arg0[%c0, %c0_0] : memref<32x32xbf16, #tpu.memory_space<vmem>>, vector<32x32xbf16>
    %c0_1 = arith.constant 0 : index
    %c0_2 = arith.constant 0 : index
    %1 = vector.load %arg1[%c0_1, %c0_2] : memref<2x32xbf16, #tpu.memory_space<vmem>>, vector<2x32xbf16>
    %2 = arith.extf %1 : vector<2x32xbf16> to vector<2x32xf32>
    %c0_3 = arith.constant 0 : index
    %c0_4 = arith.constant 0 : index
    %3 = vector.load %arg2[%c0_3, %c0_4] : memref<32x128xf32, #tpu.memory_space<vmem>>, vector<32x128xf32>
    %c0_5 = arith.constant 0 : index
    %c0_6 = arith.constant 0 : index
    %4 = vector.load %arg3[%c0_5, %c0_6] : memref<128x128xf32, #tpu.memory_space<vmem>>, vector<128x128xf32>
    %c0_7 = arith.constant 0 : index
    %c0_8 = arith.constant 0 : index
    %c0_9 = arith.constant 0 : index
    %5 = vector.load %arg5[%c0_7, %c0_8, %c0_9] : memref<3x128x128xf32, #tpu.memory_space<vmem>>, vector<1x128x128xf32>
    %6 = vector.shape_cast %5 : vector<1x128x128xf32> to vector<128x128xf32>
    %c0_10 = arith.constant 0 : index
    %c0_11 = arith.constant 0 : index
    %c0_12 = arith.constant 0 : index
    %7 = vector.load %arg6[%c0_10, %c0_11, %c0_12] : memref<3x4x128xf32, #tpu.memory_space<vmem>>, vector<1x4x128xf32>
    %8 = vector.shape_cast %7 : vector<1x4x128xf32> to vector<4x128xf32>
    %9 = vector.extract_strided_slice %8 {offsets = [0, 0], sizes = [1, 128], strides = [1, 1]} : vector<4x128xf32> to vector<1x128xf32>
    %10 = vector.extract_strided_slice %8 {offsets = [1, 0], sizes = [1, 128], strides = [1, 1]} : vector<4x128xf32> to vector<1x128xf32>
    %11 = vector.extract_strided_slice %8 {offsets = [2, 0], sizes = [1, 128], strides = [1, 1]} : vector<4x128xf32> to vector<1x128xf32>
    %12 = vector.extract_strided_slice %8 {offsets = [3, 0], sizes = [1, 128], strides = [1, 1]} : vector<4x128xf32> to vector<1x128xf32>
    %13 = arith.truncf %3 : vector<32x128xf32> to vector<32x128xbf16>
    %cst = arith.constant dense<0.000000e+00> : vector<32x128xf32>
    %14 = tpu.matmul %0, %13, %cst {dimension_numbers = #tpu.dot_dimension_numbers<[1], [0], [0], [1], [0, 0, 1, 1], [], []>} : vector<32x32xbf16>, vector<32x128xbf16>, vector<32x128xf32> -> vector<32x128xf32>
    %cst_13 = arith.constant dense<0.000000e+00> : vector<32x128xf32>
    %15 = tpu.matmul %14, %4, %cst_13 {dimension_numbers = #tpu.dot_dimension_numbers<[1], [0], [0], [1], [0, 0, 1, 1], [], []>} : vector<32x128xf32>, vector<128x128xf32>, vector<32x128xf32> -> vector<32x128xf32>
    %16 = vector.broadcast %9 : vector<1x128xf32> to vector<32x128xf32>
    %17 = arith.addf %15, %16 : vector<32x128xf32>
    %cst_14 = arith.constant 0.000000e+00 : f32
    %18 = vector.broadcast %cst_14 : f32 to vector<32x128xf32>
    %19 = arith.maximumf %17, %18 : vector<32x128xf32>
    %cst_15 = arith.constant dense<0.000000e+00> : vector<32x128xf32>
    %20 = tpu.matmul %19, %6, %cst_15 {dimension_numbers = #tpu.dot_dimension_numbers<[1], [0], [0], [1], [0, 0, 1, 1], [], []>} : vector<32x128xf32>, vector<128x128xf32>, vector<32x128xf32> -> vector<32x128xf32>
    %21 = vector.broadcast %10 : vector<1x128xf32> to vector<32x128xf32>
    %22 = arith.addf %20, %21 : vector<32x128xf32>
    %cst_16 = arith.constant 0.000000e+00 : f32
    %23 = vector.broadcast %cst_16 : f32 to vector<32x128xf32>
    %24 = arith.maximumf %22, %23 : vector<32x128xf32>
    %cst_17 = arith.constant dense<0.000000e+00> : vector<128xf32>
    %25 = vector.multi_reduction <add>, %24, %cst_17 [0] : vector<32x128xf32> to vector<128xf32>
    %26 = vector.shape_cast %25 : vector<128xf32> to vector<1x128xf32>
    %27 = arith.mulf %24, %24 : vector<32x128xf32>
    %cst_18 = arith.constant dense<0.000000e+00> : vector<128xf32>
    %28 = vector.multi_reduction <add>, %27, %cst_18 [0] : vector<32x128xf32> to vector<128xf32>
    %29 = vector.shape_cast %28 : vector<128xf32> to vector<1x128xf32>
    %cst_19 = arith.constant 3.125000e-02 : f32
    %30 = vector.broadcast %cst_19 : f32 to vector<1x128xf32>
    %31 = arith.mulf %26, %30 : vector<1x128xf32>
    %cst_20 = arith.constant 3.125000e-02 : f32
    %32 = vector.broadcast %cst_20 : f32 to vector<1x128xf32>
    %33 = arith.mulf %29, %32 : vector<1x128xf32>
    %34 = arith.mulf %31, %31 : vector<1x128xf32>
    %35 = arith.subf %33, %34 : vector<1x128xf32>
    %cst_21 = arith.constant 0.000000e+00 : f32
    %36 = vector.broadcast %cst_21 : f32 to vector<1x128xf32>
    %37 = arith.maximumf %35, %36 : vector<1x128xf32>
    %cst_22 = arith.constant 9.99999974E-6 : f32
    %38 = vector.broadcast %cst_22 : f32 to vector<1x128xf32>
    %39 = arith.addf %37, %38 : vector<1x128xf32>
    %40 = math.rsqrt %39 : vector<1x128xf32>
    %41 = arith.mulf %11, %40 : vector<1x128xf32>
    %42 = arith.mulf %31, %41 : vector<1x128xf32>
    %43 = arith.subf %12, %42 : vector<1x128xf32>
    %44 = vector.broadcast %41 : vector<1x128xf32> to vector<32x128xf32>
    %45 = arith.mulf %24, %44 : vector<32x128xf32>
    %46 = vector.broadcast %43 : vector<1x128xf32> to vector<32x128xf32>
    %47 = arith.addf %45, %46 : vector<32x128xf32>
    %c0_23 = arith.constant 0 : index
    %c0_24 = arith.constant 0 : index
    %48 = vector.load %arg7[%c0_23, %c0_24] : memref<32x384xf32, #tpu.memory_space<vmem>>, vector<32x128xf32>
    tpu.vector_store %arg7[%c0_23, %c0_24], %47 {strides = array<i32>} : memref<32x384xf32, #tpu.memory_space<vmem>>, vector<32x128xf32>,
    %cst_25 = arith.constant dense<0.000000e+00> : vector<2x128xf32>
    %49 = tpu.matmul %2, %47, %cst_25 {dimension_numbers = #tpu.dot_dimension_numbers<[1], [0], [0], [1], [0, 0, 1, 1], [], []>} : vector<2x32xf32>, vector<32x128xf32>, vector<2x128xf32> -> vector<2x128xf32>
    %c0_26 = arith.constant 0 : index
    %c0_27 = arith.constant 0 : index
    %50 = vector.load %arg8[%c0_26, %c0_27] : memref<2x384xf32, #tpu.memory_space<vmem>>, vector<2x128xf32>
    tpu.vector_store %arg8[%c0_26, %c0_27], %49 {strides = array<i32>} : memref<2x384xf32, #tpu.memory_space<vmem>>, vector<2x128xf32>,
    %c0_28 = arith.constant 0 : index
    %c0_29 = arith.constant 0 : index
    %c0_30 = arith.constant 0 : index
    %51 = vector.load %arg4[%c0_28, %c0_29, %c0_30] : memref<2x128x128xf32, #tpu.memory_space<vmem>>, vector<1x128x128xf32>
    %52 = vector.shape_cast %51 : vector<1x128x128xf32> to vector<128x128xf32>
    %c1 = arith.constant 1 : index
    %c0_31 = arith.constant 0 : index
    %c0_32 = arith.constant 0 : index
    %53 = vector.load %arg5[%c1, %c0_31, %c0_32] : memref<3x128x128xf32, #tpu.memory_space<vmem>>, vector<1x128x128xf32>
    %54 = vector.shape_cast %53 : vector<1x128x128xf32> to vector<128x128xf32>
    %c1_33 = arith.constant 1 : index
    %c0_34 = arith.constant 0 : index
    %c0_35 = arith.constant 0 : index
    %55 = vector.load %arg6[%c1_33, %c0_34, %c0_35] : memref<3x4x128xf32, #tpu.memory_space<vmem>>, vector<1x4x128xf32>
    %56 = vector.shape_cast %55 : vector<1x4x128xf32> to vector<4x128xf32>
    %57 = vector.extract_strided_slice %56 {offsets = [0, 0], sizes = [1, 128], strides = [1, 1]} : vector<4x128xf32> to vector<1x128xf32>
    %58 = vector.extract_strided_slice %56 {offsets = [1, 0], sizes = [1, 128], strides = [1, 1]} : vector<4x128xf32> to vector<1x128xf32>
    %59 = vector.extract_strided_slice %56 {offsets = [2, 0], sizes = [1, 128], strides = [1, 1]} : vector<4x128xf32> to vector<1x128xf32>
    %60 = vector.extract_strided_slice %56 {offsets = [3, 0], sizes = [1, 128], strides = [1, 1]} : vector<4x128xf32> to vector<1x128xf32>
    %61 = arith.truncf %47 : vector<32x128xf32> to vector<32x128xbf16>
    %cst_36 = arith.constant dense<0.000000e+00> : vector<32x128xf32>
    %62 = tpu.matmul %0, %61, %cst_36 {dimension_numbers = #tpu.dot_dimension_numbers<[1], [0], [0], [1], [0, 0, 1, 1], [], []>} : vector<32x32xbf16>, vector<32x128xbf16>, vector<32x128xf32> -> vector<32x128xf32>
    %cst_37 = arith.constant dense<0.000000e+00> : vector<32x128xf32>
    %63 = tpu.matmul %62, %52, %cst_37 {dimension_numbers = #tpu.dot_dimension_numbers<[1], [0], [0], [1], [0, 0, 1, 1], [], []>} : vector<32x128xf32>, vector<128x128xf32>, vector<32x128xf32> -> vector<32x128xf32>
    %64 = vector.broadcast %57 : vector<1x128xf32> to vector<32x128xf32>
    %65 = arith.addf %63, %64 : vector<32x128xf32>
    %cst_38 = arith.constant 0.000000e+00 : f32
    %66 = vector.broadcast %cst_38 : f32 to vector<32x128xf32>
    %67 = arith.maximumf %65, %66 : vector<32x128xf32>
    %cst_39 = arith.constant dense<0.000000e+00> : vector<32x128xf32>
    %68 = tpu.matmul %67, %54, %cst_39 {dimension_numbers = #tpu.dot_dimension_numbers<[1], [0], [0], [1], [0, 0, 1, 1], [], []>} : vector<32x128xf32>, vector<128x128xf32>, vector<32x128xf32> -> vector<32x128xf32>
    %69 = vector.broadcast %58 : vector<1x128xf32> to vector<32x128xf32>
    %70 = arith.addf %68, %69 : vector<32x128xf32>
    %cst_40 = arith.constant 0.000000e+00 : f32
    %71 = vector.broadcast %cst_40 : f32 to vector<32x128xf32>
    %72 = arith.maximumf %70, %71 : vector<32x128xf32>
    %cst_41 = arith.constant dense<0.000000e+00> : vector<128xf32>
    %73 = vector.multi_reduction <add>, %72, %cst_41 [0] : vector<32x128xf32> to vector<128xf32>
    %74 = vector.shape_cast %73 : vector<128xf32> to vector<1x128xf32>
    %75 = arith.mulf %72, %72 : vector<32x128xf32>
    %cst_42 = arith.constant dense<0.000000e+00> : vector<128xf32>
    %76 = vector.multi_reduction <add>, %75, %cst_42 [0] : vector<32x128xf32> to vector<128xf32>
    %77 = vector.shape_cast %76 : vector<128xf32> to vector<1x128xf32>
    %cst_43 = arith.constant 3.125000e-02 : f32
    %78 = vector.broadcast %cst_43 : f32 to vector<1x128xf32>
    %79 = arith.mulf %74, %78 : vector<1x128xf32>
    %cst_44 = arith.constant 3.125000e-02 : f32
    %80 = vector.broadcast %cst_44 : f32 to vector<1x128xf32>
    %81 = arith.mulf %77, %80 : vector<1x128xf32>
    %82 = arith.mulf %79, %79 : vector<1x128xf32>
    %83 = arith.subf %81, %82 : vector<1x128xf32>
    %cst_45 = arith.constant 0.000000e+00 : f32
    %84 = vector.broadcast %cst_45 : f32 to vector<1x128xf32>
    %85 = arith.maximumf %83, %84 : vector<1x128xf32>
    %cst_46 = arith.constant 9.99999974E-6 : f32
    %86 = vector.broadcast %cst_46 : f32 to vector<1x128xf32>
    %87 = arith.addf %85, %86 : vector<1x128xf32>
    %88 = math.rsqrt %87 : vector<1x128xf32>
    %89 = arith.mulf %59, %88 : vector<1x128xf32>
    %90 = arith.mulf %79, %89 : vector<1x128xf32>
    %91 = arith.subf %60, %90 : vector<1x128xf32>
    %92 = vector.broadcast %89 : vector<1x128xf32> to vector<32x128xf32>
    %93 = arith.mulf %72, %92 : vector<32x128xf32>
    %94 = vector.broadcast %91 : vector<1x128xf32> to vector<32x128xf32>
    %95 = arith.addf %93, %94 : vector<32x128xf32>
    %c0_47 = arith.constant 0 : index
    %c128 = arith.constant 128 : index
    %96 = vector.load %arg7[%c0_47, %c128] : memref<32x384xf32, #tpu.memory_space<vmem>>, vector<32x128xf32>
    tpu.vector_store %arg7[%c0_47, %c128], %95 {strides = array<i32>} : memref<32x384xf32, #tpu.memory_space<vmem>>, vector<32x128xf32>,
    %cst_48 = arith.constant dense<0.000000e+00> : vector<2x128xf32>
    %97 = tpu.matmul %2, %95, %cst_48 {dimension_numbers = #tpu.dot_dimension_numbers<[1], [0], [0], [1], [0, 0, 1, 1], [], []>} : vector<2x32xf32>, vector<32x128xf32>, vector<2x128xf32> -> vector<2x128xf32>
    %c0_49 = arith.constant 0 : index
    %c128_50 = arith.constant 128 : index
    %98 = vector.load %arg8[%c0_49, %c128_50] : memref<2x384xf32, #tpu.memory_space<vmem>>, vector<2x128xf32>
    tpu.vector_store %arg8[%c0_49, %c128_50], %97 {strides = array<i32>} : memref<2x384xf32, #tpu.memory_space<vmem>>, vector<2x128xf32>,
    %c1_51 = arith.constant 1 : index
    %c0_52 = arith.constant 0 : index
    %c0_53 = arith.constant 0 : index
    %99 = vector.load %arg4[%c1_51, %c0_52, %c0_53] : memref<2x128x128xf32, #tpu.memory_space<vmem>>, vector<1x128x128xf32>
    %100 = vector.shape_cast %99 : vector<1x128x128xf32> to vector<128x128xf32>
    %c2 = arith.constant 2 : index
    %c0_54 = arith.constant 0 : index
    %c0_55 = arith.constant 0 : index
    %101 = vector.load %arg5[%c2, %c0_54, %c0_55] : memref<3x128x128xf32, #tpu.memory_space<vmem>>, vector<1x128x128xf32>
    %102 = vector.shape_cast %101 : vector<1x128x128xf32> to vector<128x128xf32>
    %c2_56 = arith.constant 2 : index
    %c0_57 = arith.constant 0 : index
    %c0_58 = arith.constant 0 : index
    %103 = vector.load %arg6[%c2_56, %c0_57, %c0_58] : memref<3x4x128xf32, #tpu.memory_space<vmem>>, vector<1x4x128xf32>
    %104 = vector.shape_cast %103 : vector<1x4x128xf32> to vector<4x128xf32>
    %105 = vector.extract_strided_slice %104 {offsets = [0, 0], sizes = [1, 128], strides = [1, 1]} : vector<4x128xf32> to vector<1x128xf32>
    %106 = vector.extract_strided_slice %104 {offsets = [1, 0], sizes = [1, 128], strides = [1, 1]} : vector<4x128xf32> to vector<1x128xf32>
    %107 = vector.extract_strided_slice %104 {offsets = [2, 0], sizes = [1, 128], strides = [1, 1]} : vector<4x128xf32> to vector<1x128xf32>
    %108 = vector.extract_strided_slice %104 {offsets = [3, 0], sizes = [1, 128], strides = [1, 1]} : vector<4x128xf32> to vector<1x128xf32>
    %109 = arith.truncf %95 : vector<32x128xf32> to vector<32x128xbf16>
    %cst_59 = arith.constant dense<0.000000e+00> : vector<32x128xf32>
    %110 = tpu.matmul %0, %109, %cst_59 {dimension_numbers = #tpu.dot_dimension_numbers<[1], [0], [0], [1], [0, 0, 1, 1], [], []>} : vector<32x32xbf16>, vector<32x128xbf16>, vector<32x128xf32> -> vector<32x128xf32>
    %cst_60 = arith.constant dense<0.000000e+00> : vector<32x128xf32>
    %111 = tpu.matmul %110, %100, %cst_60 {dimension_numbers = #tpu.dot_dimension_numbers<[1], [0], [0], [1], [0, 0, 1, 1], [], []>} : vector<32x128xf32>, vector<128x128xf32>, vector<32x128xf32> -> vector<32x128xf32>
    %112 = vector.broadcast %105 : vector<1x128xf32> to vector<32x128xf32>
    %113 = arith.addf %111, %112 : vector<32x128xf32>
    %cst_61 = arith.constant 0.000000e+00 : f32
    %114 = vector.broadcast %cst_61 : f32 to vector<32x128xf32>
    %115 = arith.maximumf %113, %114 : vector<32x128xf32>
    %cst_62 = arith.constant dense<0.000000e+00> : vector<32x128xf32>
    %116 = tpu.matmul %115, %102, %cst_62 {dimension_numbers = #tpu.dot_dimension_numbers<[1], [0], [0], [1], [0, 0, 1, 1], [], []>} : vector<32x128xf32>, vector<128x128xf32>, vector<32x128xf32> -> vector<32x128xf32>
    %117 = vector.broadcast %106 : vector<1x128xf32> to vector<32x128xf32>
    %118 = arith.addf %116, %117 : vector<32x128xf32>
    %cst_63 = arith.constant 0.000000e+00 : f32
    %119 = vector.broadcast %cst_63 : f32 to vector<32x128xf32>
    %120 = arith.maximumf %118, %119 : vector<32x128xf32>
    %cst_64 = arith.constant dense<0.000000e+00> : vector<128xf32>
    %121 = vector.multi_reduction <add>, %120, %cst_64 [0] : vector<32x128xf32> to vector<128xf32>
    %122 = vector.shape_cast %121 : vector<128xf32> to vector<1x128xf32>
    %123 = arith.mulf %120, %120 : vector<32x128xf32>
    %cst_65 = arith.constant dense<0.000000e+00> : vector<128xf32>
    %124 = vector.multi_reduction <add>, %123, %cst_65 [0] : vector<32x128xf32> to vector<128xf32>
    %125 = vector.shape_cast %124 : vector<128xf32> to vector<1x128xf32>
    %cst_66 = arith.constant 3.125000e-02 : f32
    %126 = vector.broadcast %cst_66 : f32 to vector<1x128xf32>
    %127 = arith.mulf %122, %126 : vector<1x128xf32>
    %cst_67 = arith.constant 3.125000e-02 : f32
    %128 = vector.broadcast %cst_67 : f32 to vector<1x128xf32>
    %129 = arith.mulf %125, %128 : vector<1x128xf32>
    %130 = arith.mulf %127, %127 : vector<1x128xf32>
    %131 = arith.subf %129, %130 : vector<1x128xf32>
    %cst_68 = arith.constant 0.000000e+00 : f32
    %132 = vector.broadcast %cst_68 : f32 to vector<1x128xf32>
    %133 = arith.maximumf %131, %132 : vector<1x128xf32>
    %cst_69 = arith.constant 9.99999974E-6 : f32
    %134 = vector.broadcast %cst_69 : f32 to vector<1x128xf32>
    %135 = arith.addf %133, %134 : vector<1x128xf32>
    %136 = math.rsqrt %135 : vector<1x128xf32>
    %137 = arith.mulf %107, %136 : vector<1x128xf32>
    %138 = arith.mulf %127, %137 : vector<1x128xf32>
    %139 = arith.subf %108, %138 : vector<1x128xf32>
    %140 = vector.broadcast %137 : vector<1x128xf32> to vector<32x128xf32>
    %141 = arith.mulf %120, %140 : vector<32x128xf32>
    %142 = vector.broadcast %139 : vector<1x128xf32> to vector<32x128xf32>
    %143 = arith.addf %141, %142 : vector<32x128xf32>
    %c0_70 = arith.constant 0 : index
    %c256 = arith.constant 256 : index
    %144 = vector.load %arg7[%c0_70, %c256] : memref<32x384xf32, #tpu.memory_space<vmem>>, vector<32x128xf32>
    tpu.vector_store %arg7[%c0_70, %c256], %143 {strides = array<i32>} : memref<32x384xf32, #tpu.memory_space<vmem>>, vector<32x128xf32>,
    %cst_71 = arith.constant dense<0.000000e+00> : vector<2x128xf32>
    %145 = tpu.matmul %2, %143, %cst_71 {dimension_numbers = #tpu.dot_dimension_numbers<[1], [0], [0], [1], [0, 0, 1, 1], [], []>} : vector<2x32xf32>, vector<32x128xf32>, vector<2x128xf32> -> vector<2x128xf32>
    %c0_72 = arith.constant 0 : index
    %c256_73 = arith.constant 256 : index
    %146 = vector.load %arg8[%c0_72, %c256_73] : memref<2x384xf32, #tpu.memory_space<vmem>>, vector<2x128xf32>
    tpu.vector_store %arg8[%c0_72, %c256_73], %145 {strides = array<i32>} : memref<2x384xf32, #tpu.memory_space<vmem>>, vector<2x128xf32>,
    return
  }
}

</mosaic_0001>

<bundles_post_ra>
// kernel: _fused_call.1
= control target key start
LH: loop header
LB: loop body
LE: loop exit
PB: predicated region body
PF: predicated region fallthrough
CT: control target
= control target key end

     0   :  { %14 = vsyncpa [#allocation3], 0  ;;  %s2447_s0 = inlined_call_operand.hbm [shape: bf16[32,32], index: 0, kind: input, shape index: {}]   ;;  %s2448_s1 = inlined_call_operand.vmem [shape: bf16[2,32], index: 1, kind: input, shape index: {}]   ;;  %s2449_s2 = inlined_call_operand.hbm [shape: f32[32,128], index: 2, kind: input, shape index: {}]   ;;  %s2450_s3 = inlined_call_operand.hbm [shape: f32[128,128], index: 3, kind: input, shape index: {}]   ;;  %s2451_s4 = inlined_call_operand.hbm [shape: f32[2,128,128], index: 4, kind: input, shape index: {}]   ;;  %s2452_s5 = inlined_call_operand.hbm [shape: f32[3,128,128], index: 5, kind: input, shape index: {}]   ;;  %s2453_s6 = inlined_call_operand.vmem [shape: f32[3,4,128], index: 6, kind: input, shape index: {}]   ;;  %s2454_s7 = inlined_call_operand.hbm [shape: f32[32,384], index: 7, kind: output, shape index: {0}]   ;;  %s2455_s8 = inlined_call_operand.hbm [shape: f32[2,384], index: 8, kind: output, shape index: {1}]  }
   0x1   :  { %15 = vsyncpa [#allocation6], 0 }
   0x2   :  { %16 = vsyncpa [#allocation9], 0 }
   0x3   :  { %17 = vsyncpa [#allocation4], 0 }
   0x4   :  { %18 = vsyncpa [#allocation13], 0  ;;  %s2198_s27 = smov [#allocation5]   ;;  %s2034_s9 = scalar_lea.hbm %s2449_s2, 512 }
   0x5   :  { %s38_s28 = sshll.u32 %s2198_s27, 4  ;;  %p2035_p0 = scmp.ne.s32.totalorder %s2449_s2, %s2034_s9  ;;  %s39_s28 = int_to_ptr.vmem [resolvable:$true] %s38_s28 }
   0x6   :  { %p2038_p1 = scmp.lt.u32.totalorder %s2034_s9, %s2449_s2 }
   0x8   :  { %p2040_p2 = pnand %p2038_p1, %p2035_p0 }
   0xa   :  { %2043 = shalt.err (!%p2040_p2)
}
   0xb   :  { %s2044_s14 = scalar_lea.vmem %s39_s28, 512  ;;  %p2049_p4 = scmp.lt.s32.totalorder %s39_s28, %s39_s28 }
   0xc   :  { %p2045_p3 = scmp.ne.s32.totalorder %s39_s28, %s2044_s14  ;;  %p2050_p5 = scmp.lt.s32.totalorder %s2044_s14, %s2044_s14 }
   0xe   :  { %p2051_p6 = por %p2050_p5, %p2049_p4 }
  0x10   :  { %p2052_p7 = pnand %p2051_p6, %p2045_p3 }
  0x12   :  { %2055 = shalt.err (!%p2052_p7)
}
  0x13   :  { %s2199_s15 = smov 128   ;;  %s2200_s16 = smov 8  }
  0x14   :  { %44 = dma.hbm_to_vmem [thread:$0]  %s2449_s2, 512, %s39_s28, [#allocation6], %s2199_s15, %s2199_s15, %s2200_s16  }
  0x15   :  { %s2201_s19 = smov [#allocation8]   ;;  %s2202_s21 = smov [#allocation2]  }
  0x16   :  { %s62_s20 = sshll.u32 %s2201_s19, 4  ;;  %s24_s22 = sshll.u32 %s2202_s21, 4  ;;  %s63_s20 = int_to_ptr.vmem [resolvable:$true] %s62_s20  ;;  %s25_s22 = int_to_ptr.vmem [resolvable:$true] %s24_s22 }
  0x17   :  { %s2056_s25 = scalar_lea.hbm %s2451_s4, 4096 }
  0x18   :  { %p2057_p8 = scmp.ne.s32.totalorder %s2451_s4, %s2056_s25  ;;  %p2060_p9 = scmp.lt.u32.totalorder %s2056_s25, %s2451_s4 }
  0x1a   :  { %p2062_p10 = pnand %p2060_p9, %p2057_p8 }
  0x1c   :  { %2065 = shalt.err (!%p2062_p10)
}
  0x1d   :  { %s2066_s2 = scalar_lea.vmem %s63_s20, 4096  ;;  %p2071_p12 = scmp.lt.s32.totalorder %s63_s20, %s63_s20 }
  0x1e   :  { %p2067_p11 = scmp.ne.s32.totalorder %s63_s20, %s2066_s2  ;;  %p2072_p13 = scmp.lt.s32.totalorder %s2066_s2, %s2066_s2 }
  0x20   :  { %p2073_p0 = por %p2072_p13, %p2071_p12 }
  0x22   :  { %p2074_p1 = pnand %p2073_p0, %p2067_p11 }
  0x24   :  { %2077 = shalt.err (!%p2074_p1)
}
  0x25   :  { %68 = dma.hbm_to_vmem [thread:$0]  %s2451_s4, 4096, %s63_s20, [#allocation9], %s2199_s15, %s2199_s15, %s2200_s16  }
  0x26   :  { %s2078_s12 = scalar_lea.hbm %s2447_s0, 256 }
  0x27   :  { %p2079_p2 = scmp.ne.s32.totalorder %s2447_s0, %s2078_s12  ;;  %p2082_p3 = scmp.lt.u32.totalorder %s2078_s12, %s2447_s0 }
  0x29   :  { %p2084_p4 = pnand %p2082_p3, %p2079_p2 }
  0x2b   :  { %2087 = shalt.err (!%p2084_p4)
}
  0x2c   :  { %s2088_s19 = scalar_lea.vmem %s25_s22, 256  ;;  %p2093_p6 = scmp.lt.s32.totalorder %s25_s22, %s25_s22 }
  0x2d   :  { %p2089_p5 = scmp.ne.s32.totalorder %s25_s22, %s2088_s19  ;;  %p2094_p7 = scmp.lt.s32.totalorder %s2088_s19, %s2088_s19 }
  0x2f   :  { %p2095_p8 = por %p2094_p7, %p2093_p6 }
  0x31   :  { %p2096_p9 = pnand %p2095_p8, %p2089_p5 }
  0x33   :  { %2099 = shalt.err (!%p2096_p9)
}
  0x34   :  { %s2203_s4 = smov 64   ;;  %s2204_s20 = smov 4  }
  0x35   :  { %30 = dma.hbm_to_vmem [thread:$0]  %s2447_s0, 256, %s25_s22, [#allocation3], %s2203_s4, %s2203_s4, %s2204_s20  }
  0x36   :  { %s2205_s24 = smov [#allocation7]   ;;  %s2206_s26 = smov [#allocation10]  }
  0x37   :  { %s50_s25 = sshll.u32 %s2205_s24, 4  ;;  %s74_s27 = sshll.u32 %s2206_s26, 4  ;;  %s51_s25 = int_to_ptr.vmem [resolvable:$true] %s50_s25  ;;  %s75_s27 = int_to_ptr.vmem [resolvable:$true] %s74_s27 }
  0x38   :  { %s2100_s2 = scalar_lea.hbm %s2450_s3, 2048 }
  0x39   :  { %p2101_p10 = scmp.ne.s32.totalorder %s2450_s3, %s2100_s2  ;;  %p2104_p11 = scmp.lt.u32.totalorder %s2100_s2, %s2450_s3 }
  0x3b   :  { %p2106_p12 = pnand %p2104_p11, %p2101_p10 }
  0x3d   :  { %2109 = shalt.err (!%p2106_p12)
}
  0x3e   :  { %s2110_s0 = scalar_lea.vmem %s51_s25, 2048  ;;  %p2115_p0 = scmp.lt.s32.totalorder %s51_s25, %s51_s25 }
  0x3f   :  { %p2111_p13 = scmp.ne.s32.totalorder %s51_s25, %s2110_s0  ;;  %p2116_p1 = scmp.lt.s32.totalorder %s2110_s0, %s2110_s0 }
  0x41   :  { %p2117_p2 = por %p2116_p1, %p2115_p0 }
  0x43   :  { %p2118_p3 = pnand %p2117_p2, %p2111_p13 }
  0x45   :  { %2121 = shalt.err (!%p2118_p3)
}
  0x46   :  { %56 = dma.hbm_to_vmem [thread:$0]  %s2450_s3, 2048, %s51_s25, [#allocation6], %s2199_s15, %s2199_s15, %s2200_s16  }
  0x47   :  { %s2122_s17 = scalar_lea.hbm %s2452_s5, 6144 }
  0x48   :  { %p2123_p4 = scmp.ne.s32.totalorder %s2452_s5, %s2122_s17  ;;  %p2126_p5 = scmp.lt.u32.totalorder %s2122_s17, %s2452_s5 }
  0x4a   :  { %p2128_p6 = pnand %p2126_p5, %p2123_p4 }
  0x4c   :  { %2131 = shalt.err (!%p2128_p6)
}
  0x4d   :  { %s2132_s21 = scalar_lea.vmem %s75_s27, 6144  ;;  %p2137_p8 = scmp.lt.s32.totalorder %s75_s27, %s75_s27 }
  0x4e   :  { %p2133_p7 = scmp.ne.s32.totalorder %s75_s27, %s2132_s21  ;;  %p2138_p9 = scmp.lt.s32.totalorder %s2132_s21, %s2132_s21 }
  0x50   :  { %p2139_p10 = por %p2138_p9, %p2137_p8 }
  0x52   :  { %p2140_p11 = pnand %p2139_p10, %p2133_p7 }
  0x54   :  { %2143 = shalt.err (!%p2140_p11)
}
  0x55   :  { %80 = dma.hbm_to_vmem [thread:$0]  %s2452_s5, 6144, %s75_s27, [#allocation9], %s2199_s15, %s2199_s15, %s2200_s16  }
  0x56   :  { %2188 = dma.done.wait [#allocation3], 256  }
  0x57   :  { %2189 = vsyncadd [#allocation3], 4294967040 }
  0x58   :  { %2190 = dma.done.wait [#allocation6], 2560  }
  0x59   :  { %2191 = vsyncadd [#allocation6], 4294964736 }
  0x5a   :  { %2192 = dma.done.wait [#allocation9], 10240  }
  0x5b   :  { %2193 = vsyncadd [#allocation9], 4294957056  ;;  %v105_v0 = vld [vmem:[#allocation5] sm:$0xff]  ;;  %v106_v1 = vld [vmem:[#allocation5 + $0x8] sm:$0xff]  ;;  %vm154_vm0 = vcmask 261120   ;;  %v210_v60 = vlaneseq  ;;  %vm2208_vm1 = vmmov 0  }
  0x5c   :  { %v107_v2 = vld [vmem:[#allocation5 + $0x10] sm:$0xff]  ;;  %v142_v3 = vpack.c.bf16 %v106_v1, %v105_v0  ;;  %v108_v4 = vld [vmem:[#allocation5 + $0x18] sm:$0xff]  ;;  %v109_v7 = vld [vmem:[#allocation7] sm:$0xff] }
  0x5d   :  { %v143_v5 = vpack.c.bf16 %v108_v4, %v107_v2  ;;  %v2331_v6 = vld [vmem:[#allocation2] sm:$0xff]   ;;  %v110_v8 = vld [vmem:[#allocation7 + $0x8] sm:$0xff]  ;;  %v112_v11 = vld [vmem:[#allocation7 + $0x18] sm:$0xff]  ;;  %v2339_v61 = vshrl.u32 %v210_v60, 7 }
  0x5e   :  { %1515 = vmatprep.subr.bf16.mxu0 %v142_v3  ;;  %1519 = vmatprep.mubr.msk.bf16.mxu0 %vm154_vm0, %v2331_v6  ;;  %v1800_v9 = vpack.c.bf16 %v110_v8, %v109_v7  ;;  %v111_v10 = vld [vmem:[#allocation7 + $0x10] sm:$0xff]  ;;  %v113_v13 = vld [vmem:[#allocation7 + $0x20] sm:$0xff]  ;;  %v114_v14 = vld [vmem:[#allocation7 + $0x28] sm:$0xff] }
  0x5f   :  { %1516 = vmatpush3.bf16.msra.mxu0 %v142_v3  ;;  %v1804_v12 = vpack.c.bf16 %v112_v11, %v111_v10  ;;  %v2335_v15 = vld [vmem:[#allocation2 + $0x8] sm:$0xff]   ;;  %v1808_v16 = vpack.c.bf16 %v114_v14, %v113_v13  ;;  %v115_v17 = vld [vmem:[#allocation7 + $0x30] sm:$0xff]  ;;  %v117_v20 = vld [vmem:[#allocation7 + $0x40] sm:$0xff]  ;;  %v2342_v62 = vsub.s32 0, %v2339_v61  ;;  %v2207_v14 = vmov 0.0|0.0  }
  0x60   :  { %1517 = vmatprep.subr.bf16.mxu0 %v143_v5  ;;  %1801 = vmatprep.subr.bf16.mxu1 %v1800_v9  ;;  %v116_v18 = vld [vmem:[#allocation7 + $0x38] sm:$0xff]  ;;  %v118_v21 = vld [vmem:[#allocation7 + $0x48] sm:$0xff]  ;;  %v119_v23 = vld [vmem:[#allocation7 + $0x50] sm:$0xff] }
  0x61   :  { %1803 = vmatpush3.bf16.msra.mxu1 %v1800_v9  ;;  %v1812_v19 = vpack.c.bf16 %v116_v18, %v115_v17  ;;  %v1816_v22 = vpack.c.bf16 %v118_v21, %v117_v20  ;;  %v120_v24 = vld [vmem:[#allocation7 + $0x58] sm:$0xff]  ;;  %v121_v26 = vld [vmem:[#allocation7 + $0x60] sm:$0xff]  ;;  %v122_v27 = vld [vmem:[#allocation7 + $0x68] sm:$0xff]  ;;  %v2357_v17 = vsub.s32 1, %v2339_v61 }
  0x62   :  { %1805 = vmatprep.subr.bf16.mxu1 %v1804_v12  ;;  %v1820_v25 = vpack.c.bf16 %v120_v24, %v119_v23  ;;  %v1824_v28 = vpack.c.bf16 %v122_v27, %v121_v26  ;;  %v123_v29 = vld [vmem:[#allocation7 + $0x70] sm:$0xff]  ;;  %v124_v30 = vld [vmem:[#allocation7 + $0x78] sm:$0xff]  ;;  %v125_v32 = vld [vmem:[#allocation10] sm:$0xff] }
  0x63   :  { %1518 = vmatpush3.bf16.msra.mxu0 %v143_v5  ;;  %v1828_v31 = vpack.c.bf16 %v124_v30, %v123_v29  ;;  %v126_v33 = vld [vmem:[#allocation10 + $0x8] sm:$0xff]  ;;  %v127_v34 = vld [vmem:[#allocation10 + $0x10] sm:$0xff]  ;;  %v128_v36 = vld [vmem:[#allocation10 + $0x18] sm:$0xff] }
  0x64   :  { %v1832_v35 = vpack.c.bf16 %v126_v33, %v125_v32  ;;  %v1836_v37 = vpack.c.bf16 %v128_v36, %v127_v34  ;;  %v129_v38 = vld [vmem:[#allocation10 + $0x20] sm:$0xff]  ;;  %v130_v39 = vld [vmem:[#allocation10 + $0x28] sm:$0xff]  ;;  %v131_v41 = vld [vmem:[#allocation10 + $0x30] sm:$0xff] }
  0x65   :  { %1807 = vmatpush3.bf16.msra.mxu1 %v1804_v12  ;;  %v1840_v40 = vpack.c.bf16 %v130_v39, %v129_v38  ;;  %v132_v42 = vld [vmem:[#allocation10 + $0x38] sm:$0xff]  ;;  %v133_v44 = vld [vmem:[#allocation10 + $0x40] sm:$0xff]  ;;  %v134_v45 = vld [vmem:[#allocation10 + $0x48] sm:$0xff] }
  0x66   :  { %1520 = vmatmul.mubr.msk.bf16.vlgmr.msra.gmra.mrb[0].mxu0 %vm154_vm0, %v2335_v15  ;;  %1809 = vmatprep.subr.bf16.mxu1 %v1808_v16  ;;  %v1844_v43 = vpack.c.bf16 %v132_v42, %v131_v41  ;;  %v1848_v46 = vpack.c.bf16 %v134_v45, %v133_v44  ;;  %v135_v47 = vld [vmem:[#allocation10 + $0x50] sm:$0xff]  ;;  %v136_v48 = vld [vmem:[#allocation10 + $0x58] sm:$0xff]  ;;  %v137_v50 = vld [vmem:[#allocation10 + $0x60] sm:$0xff] }
  0x67   :  { %1833 = vmatprep.subr.bf16.mxu0 %v1832_v35  ;;  %v1852_v49 = vpack.c.bf16 %v136_v48, %v135_v47  ;;  %v138_v51 = vld [vmem:[#allocation10 + $0x68] sm:$0xff]  ;;  %v139_v57 = vld [vmem:[#allocation10 + $0x70] sm:$0xff]  ;;  %v140_v58 = vld [vmem:[#allocation10 + $0x78] sm:$0xff] }
  0x68   :  { %1835 = vmatpush3.bf16.msra.mxu0 %v1832_v35  ;;  %v1856_v52 = vpack.c.bf16 %v138_v51, %v137_v50  ;;  %v1860_v59 = vpack.c.bf16 %v140_v58, %v139_v57  ;;  %v2347_v63 = vld [vmem:[%s2453_s6] sm:$0xf] }
  0x69   :  { %1811 = vmatpush3.bf16.msra.mxu1 %v1808_v16  ;;  %1837 = vmatprep.subr.bf16.mxu0 %v1836_v37  ;;  %v213_v0 = vrot.slane %v2347_v63, %v2342_v62  ;;  %v2209_v16 = vmov 0.0   ;;  %v306_v18 = vrot.slane %v2347_v63, %v2357_v17 }
  0x6a   :  { %1813 = vmatprep.subr.bf16.mxu1 %v1812_v19 }
  0x6c   :  { %1839 = vmatpush3.bf16.msra.mxu0 %v1836_v37 }
  0x6d   :  { %1815 = vmatpush3.bf16.msra.mxu1 %v1812_v19  ;;  %1841 = vmatprep.subr.bf16.mxu0 %v1840_v40 }
  0x6e   :  { %1817 = vmatprep.subr.bf16.mxu1 %v1816_v22 }
  0x70   :  { %1843 = vmatpush3.bf16.msra.mxu0 %v1840_v40 }
  0x71   :  { %1819 = vmatpush3.bf16.msra.mxu1 %v1816_v22  ;;  %1845 = vmatprep.subr.bf16.mxu0 %v1844_v43 }
  0x72   :  { %1821 = vmatprep.subr.bf16.mxu1 %v1820_v25 }
  0x74   :  { %1847 = vmatpush3.bf16.msra.mxu0 %v1844_v43 }
  0x75   :  { %1823 = vmatpush3.bf16.msra.mxu1 %v1820_v25  ;;  %1849 = vmatprep.subr.bf16.mxu0 %v1848_v46 }
  0x76   :  { %1825 = vmatprep.subr.bf16.mxu1 %v1824_v28 }
  0x78   :  { %1851 = vmatpush3.bf16.msra.mxu0 %v1848_v46 }
  0x79   :  { %1827 = vmatpush3.bf16.msra.mxu1 %v1824_v28  ;;  %1853 = vmatprep.subr.bf16.mxu0 %v1852_v49 }
  0x7a   :  { %1829 = vmatprep.subr.bf16.mxu1 %v1828_v31 }
  0x7c   :  { %1855 = vmatpush3.bf16.msra.mxu0 %v1852_v49 }
  0x7d   :  { %1831 = vmatpush3.bf16.msra.mxu1 %v1828_v31  ;;  %1857 = vmatprep.subr.bf16.mxu0 %v1856_v52 }
  0x7e   :  { %1864 = vmatprep.subr.bf16.mxu1 %v2207_v14 }
  0x80   :  { %1859 = vmatpush3.bf16.msra.mxu0 %v1856_v52 }
  0x81   :  { %1861 = vmatprep.subr.bf16.mxu0 %v1860_v59 }
  0x84   :  { %1863 = vmatpush3.bf16.msra.mxu0 %v1860_v59  ;;  %v2362_v59 = vsub.s32 2, %v2339_v61 }
 0x139   :  { %v1521_v53 = vpop.f32.mrb[0].mxu0 }
 0x13a   :  { %v195_v54 = vpop.f32.mrb[1].mxu0 }
 0x13b   :  { %v1522_v55 = vpop.f32.mrb[2].mxu0  ;;  %1555 = vmatprep.mubr.f32.mxu1 %v195_v54 }
 0x13c   :  { %v198_v56 = vpop.f32.mrb[3].mxu0 }
 0x13d   :  { %1556 = vmatmul.mubr.f32.vlgmr.msra.gmra.mrb[0].mxu1 %v198_v56 }
 0x13e   :  { %1558 = vmatprep.mubr.f32.mxu1 %v1521_v53 }
 0x141   :  { %1559 = vmatmul.mubr.f32.gmra.mrb[2].mxu1 %v1522_v55 }
 0x142   :  { %1607 = vmatprep.mubr.msk.f32.mxu1 %vm2208_vm1, %v2209_v16 }
 0x210   :  { %v1557_v1 = vpop.f32.mrb[0].mxu1 }
 0x211   :  { %v286_v2 = vadd.f32 %v1557_v1, %v213_v0  ;;  %v280_v3 = vpop.f32.mrb[1].mxu1 }
 0x212   :  { %v281_v4 = vadd.f32 %v280_v3, %v213_v0  ;;  %v2367_v3 = vsub.s32 3, %v2339_v61 }
 0x213   :  { %v300_v8 = vmax.f32 %v286_v2, 0.0 }
 0x214   :  { %v299_v5 = vmax.f32 %v281_v4, 0.0  ;;  %v1560_v7 = vpop.f32.mrb[2].mxu1 }
 0x215   :  { %v296_v9 = vadd.f32 %v1560_v7, %v213_v0  ;;  %v290_v10 = vpop.f32.mrb[3].mxu1 }
 0x216   :  { %v291_v11 = vadd.f32 %v290_v10, %v213_v0  ;;  %1593 = vmatprep.mubr.f32.mxu0 %v299_v5 }
 0x217   :  { %1594 = vmatmul.mubr.f32.vlgmr.msra.gmra.mrb[4].mxu0 %v300_v8  ;;  %v302_v13 = vmax.f32 %v296_v9, 0.0 }
 0x218   :  { %v301_v12 = vmax.f32 %v291_v11, 0.0 }
 0x21a   :  { %1596 = vmatprep.mubr.f32.mxu0 %v301_v12 }
 0x21b   :  { %1597 = vmatmul.mubr.f32.gmra.mrb[6].mxu0 %v302_v13 }
 0x21c   :  { %1614 = vmatprep.mubr.msk.bf16.mxu0 %vm154_vm0, %v2331_v6 }
 0x2ea   :  { %v1595_v19 = vpop.f32.mrb[4].mxu0 }
 0x2eb   :  { %v379_v20 = vadd.f32 %v1595_v19, %v306_v18  ;;  %v373_v21 = vpop.f32.mrb[5].mxu0 }
 0x2ec   :  { %v374_v22 = vadd.f32 %v373_v21, %v306_v18  ;;  %v525_v21 = vld [vmem:[#allocation8] sm:$0xff] }
 0x2ed   :  { %v393_v23 = vmax.f32 %v379_v20, 0.0 }
 0x2ee   :  { %v392_v24 = vmax.f32 %v374_v22, 0.0  ;;  %v1598_v25 = vpop.f32.mrb[6].mxu0  ;;  %v526_v22 = vld [vmem:[#allocation8 + $0x8] sm:$0xff] }
 0x2ef   :  { %v406_v26 = vmul.f32 %v393_v23, %v393_v23  ;;  %v389_v27 = vadd.f32 %v1598_v25, %v306_v18  ;;  %v383_v28 = vpop.f32.mrb[7].mxu0  ;;  %v528_v25 = vld [vmem:[#allocation8 + $0x18] sm:$0xff] }
 0x2f0   :  { %v396_v29 = vadd.f32 %v393_v23, %v392_v24  ;;  %v405_v30 = vmul.f32 %v392_v24, %v392_v24  ;;  %v384_v31 = vadd.f32 %v383_v28, %v306_v18  ;;  %v529_v28 = vld [vmem:[#allocation8 + $0x20] sm:$0xff] }
 0x2f1   :  { %v395_v33 = vmax.f32 %v389_v27, 0.0 }
 0x2f2   :  { %v409_v32 = vadd.f32 %v406_v26, %v405_v30  ;;  %v394_v34 = vmax.f32 %v384_v31, 0.0  ;;  %v531_v31 = vld [vmem:[#allocation8 + $0x30] sm:$0xff] }
 0x2f3   :  { %v408_v37 = vmul.f32 %v395_v33, %v395_v33 }
 0x2f4   :  { %v397_v35 = vadd.f32 %v396_v29, %v394_v34  ;;  %v407_v36 = vmul.f32 %v394_v34, %v394_v34  ;;  %v530_v29 = vld [vmem:[#allocation8 + $0x28] sm:$0xff] }
 0x2f5   :  { %v1878_v30 = vpack.c.bf16 %v530_v29, %v529_v28 }
 0x2f6   :  { %v398_v38 = vadd.f32 %v397_v35, %v395_v33  ;;  %v410_v39 = vadd.f32 %v409_v32, %v407_v36  ;;  %v532_v32 = vld [vmem:[#allocation8 + $0x38] sm:$0xff]  ;;  %v534_v35 = vld [vmem:[#allocation8 + $0x48] sm:$0xff] }
 0x2f8   :  { %v399_v40 = vrot.slane %v398_v38, 4  ;;  %v411_v41 = vadd.f32 %v410_v39, %v408_v37  ;;  %v535_v37 = vld [vmem:[#allocation8 + $0x50] sm:$0xff] }
 0x2fa   :  { %v400_v42 = vadd.f32 %v399_v40, %v398_v38  ;;  %v412_v43 = vrot.slane %v411_v41, 4  ;;  %v536_v38 = vld [vmem:[#allocation8 + $0x58] sm:$0xff]  ;;  %v537_v40 = vld [vmem:[#allocation8 + $0x60] sm:$0xff] }
 0x2fb   :  { %v1890_v39 = vpack.c.bf16 %v536_v38, %v535_v37 }
 0x2fc   :  { %v401_v44 = vrot.slane %v400_v42, 2  ;;  %v413_v45 = vadd.f32 %v412_v43, %v411_v41  ;;  %v538_v41 = vld [vmem:[#allocation8 + $0x68] sm:$0xff]  ;;  %v539_v43 = vld [vmem:[#allocation8 + $0x70] sm:$0xff] }
 0x2fe   :  { %v402_v46 = vadd.f32 %v401_v44, %v400_v42  ;;  %v414_v47 = vrot.slane %v413_v45, 2  ;;  %v1894_v42 = vpack.c.bf16 %v538_v41, %v537_v40  ;;  %v540_v44 = vld [vmem:[#allocation8 + $0x78] sm:$0xff] }
 0x300   :  { %v403_v48 = vrot.slane %v402_v46, 1  ;;  %v415_v49 = vadd.f32 %v414_v47, %v413_v45  ;;  %v1898_v45 = vpack.c.bf16 %v540_v44, %v539_v43  ;;  %v543_v47 = vld [vmem:[#allocation10 + $0x88] sm:$0xff] }
 0x302   :  { %v404_v50 = vadd.f32 %v403_v48, %v402_v46  ;;  %v416_v51 = vrot.slane %v415_v49, 1  ;;  %v542_v46 = vld [vmem:[#allocation10 + $0x80] sm:$0xff]  ;;  %v544_v48 = vld [vmem:[#allocation10 + $0x90] sm:$0xff] }
 0x304   :  { %v417_v52 = vadd.f32 %v416_v51, %v415_v49  ;;  %v418_v53 = vmul.f32 0.03125, %v404_v50  ;;  %v1902_v49 = vpack.c.bf16 %v543_v47, %v542_v46  ;;  %v545_v50 = vld [vmem:[#allocation10 + $0x98] sm:$0xff] }
 0x305   :  { %v1906_v51 = vpack.c.bf16 %v545_v50, %v544_v48 }
 0x306   :  { %v419_v54 = vmul.f32 0.03125, %v417_v52  ;;  %v420_v55 = vmul.f32 %v418_v53, %v418_v53  ;;  %v546_v52 = vld [vmem:[#allocation10 + $0xa0] sm:$0xff] }
 0x308   :  { %v421_v56 = vsub.f32 %v419_v54, %v420_v55  ;;  %v548_v55 = vld [vmem:[#allocation10 + $0xb0] sm:$0xff] }
 0x30a   :  { %v422_v57 = vmax.f32 %v421_v56, 0.0  ;;  %v549_v56 = vld [vmem:[#allocation10 + $0xb8] sm:$0xff] }
 0x30c   :  { %v423_v58 = vadd.f32 1e-05, %v422_v57  ;;  %v1914_v57 = vpack.c.bf16 %v549_v56, %v548_v55 }
 0x30e   :  { %2028 = vrsqrt.f32 %v423_v58  ;;  %v550_v58 = vld [vmem:[#allocation10 + $0xc0] sm:$0xff] }
 0x318   :  { %v2029_v60 = vpop.eup %2028 }
 0x319   :  { %v425_v0 = vmul.f32 %v2029_v60, %v2347_v63  ;;  %v551_v60 = vld [vmem:[#allocation10 + $0xc8] sm:$0xff] }
 0x31b   :  { %v426_v1 = vmul.f32 %v425_v0, %v418_v53  ;;  %v434_v2 = vrot.slane %v425_v0, %v2362_v59  ;;  %v547_v53 = vld [vmem:[#allocation10 + $0xa8] sm:$0xff]  ;;  %v1918_v0 = vpack.c.bf16 %v551_v60, %v550_v58 }
 0x31c   :  { %v1910_v54 = vpack.c.bf16 %v547_v53, %v546_v52 }
 0x31d   :  { %v428_v4 = vrot.slane %v426_v1, 7  ;;  %v437_v5 = vmul.f32 %v434_v2, %v394_v34  ;;  %v435_v7 = vmul.f32 %v434_v2, %v392_v24  ;;  %v436_v8 = vmul.f32 %v434_v2, %v393_v23  ;;  %v527_v24 = vld [vmem:[#allocation8 + $0x10] sm:$0xff]  ;;  %v533_v34 = vld [vmem:[#allocation8 + $0x40] sm:$0xff] }
 0x31e   :  { %v438_v9 = vmul.f32 %v434_v2, %v395_v33  ;;  %v1870_v23 = vpack.c.bf16 %v526_v22, %v525_v21  ;;  %v1874_v27 = vpack.c.bf16 %v528_v25, %v527_v24  ;;  %v1882_v33 = vpack.c.bf16 %v532_v32, %v531_v31  ;;  %v552_v1 = vld [vmem:[#allocation10 + $0xd0] sm:$0xff]  ;;  %v553_v2 = vld [vmem:[#allocation10 + $0xd8] sm:$0xff] }
 0x31f   :  { %v430_v10 = vsub.f32 %v2347_v63, %v428_v4  ;;  %v103_v63 = vld [vmem:[%s2448_s1] sm:$0x1]  ;;  %v1886_v36 = vpack.c.bf16 %v534_v35, %v533_v34  ;;  %v1922_v4 = vpack.c.bf16 %v553_v2, %v552_v1  ;;  %v2387_v21 = vld [vmem:[%s2453_s6 + $0x4] sm:$0xf] }
 0x320   :  { %v2375_v26 = vunpack.c.l.bf16 %v103_v63  ;;  %v614_v22 = vrot.slane %v2387_v21, %v2342_v62  ;;  %v707_v35 = vrot.slane %v2387_v21, %v2357_v17 }
 0x321   :  { %v442_v11 = vrot.slane %v430_v10, %v2367_v3 }
 0x323   :  { %v443_v12 = vadd.f32 %v442_v11, %v435_v7  ;;  %v444_v13 = vadd.f32 %v442_v11, %v436_v8  ;;  %v445_v18 = vadd.f32 %v442_v11, %v437_v5  ;;  %v446_v19 = vadd.f32 %v442_v11, %v438_v9  ;;  %v554_v5 = vld [vmem:[#allocation10 + $0xe0] sm:$0xff]  ;;  %v555_v7 = vld [vmem:[#allocation10 + $0xe8] sm:$0xff] }
 0x324   :  { %v1926_v8 = vpack.c.bf16 %v555_v7, %v554_v5 }
 0x325   :  { %447 = vst [vmem:[#allocation11] sm:$0xff] %v443_v12  ;;  %448 = vst [vmem:[#allocation11 + $0x18] sm:$0xff] %v444_v13  ;;  %v1865_v20 = vpack.c.bf16 %v444_v13, %v443_v12  ;;  %v1868_v61 = vpack.c.bf16 %v446_v19, %v445_v18 }
 0x326   :  { %449 = vst [vmem:[#allocation11 + $0x30] sm:$0xff] %v445_v18  ;;  %450 = vst [vmem:[#allocation11 + $0x48] sm:$0xff] %v446_v19  ;;  %v556_v19 = vld [vmem:[#allocation10 + $0xf0] sm:$0xff] }
 0x327   :  { %1866 = vmatpush3.bf16.msra.mxu1 %v1865_v20  ;;  %1610 = vmatprep.subr.bf16.mxu0 %v1865_v20 }
 0x328   :  { %1611 = vmatpush3.bf16.msra.mxu0 %v1865_v20  ;;  %1867 = vmatprep.subr.bf16.mxu1 %v2207_v14  ;;  %v557_v20 = vld [vmem:[#allocation10 + $0xf8] sm:$0xff] }
 0x329   :  { %1612 = vmatprep.subr.bf16.mxu0 %v1868_v61 }
 0x32b   :  { %1869 = vmatpush3.bf16.msra.mxu1 %v1868_v61 }
 0x32c   :  { %1613 = vmatpush3.bf16.msra.mxu0 %v1868_v61  ;;  %1871 = vmatprep.subr.bf16.mxu1 %v1870_v23  ;;  %v1930_v61 = vpack.c.bf16 %v557_v20, %v556_v19 }
 0x32d   :  { %1903 = vmatprep.subr.bf16.mxu0 %v1902_v49 }
 0x32e   :  { %1608 = vmatmul.mubr.msk.f32.vlgmr.msra.gmra.mrb[4].mxu1 %vm154_vm0, %v2375_v26 }
 0x32f   :  { %1615 = vmatmul.mubr.msk.bf16.vlgmr.msra.gmra.mrb[8].mxu0 %vm154_vm0, %v2335_v15  ;;  %1873 = vmatpush3.bf16.msra.mxu1 %v1870_v23 }
 0x330   :  { %1875 = vmatprep.subr.bf16.mxu1 %v1874_v27  ;;  %1905 = vmatpush3.bf16.msra.mxu0 %v1902_v49 }
 0x331   :  { %1907 = vmatprep.subr.bf16.mxu0 %v1906_v51 }
 0x333   :  { %1877 = vmatpush3.bf16.msra.mxu1 %v1874_v27 }
 0x334   :  { %1879 = vmatprep.subr.bf16.mxu1 %v1878_v30  ;;  %1909 = vmatpush3.bf16.msra.mxu0 %v1906_v51 }
 0x335   :  { %1911 = vmatprep.subr.bf16.mxu0 %v1910_v54 }
 0x337   :  { %1881 = vmatpush3.bf16.msra.mxu1 %v1878_v30 }
 0x338   :  { %1883 = vmatprep.subr.bf16.mxu1 %v1882_v33  ;;  %1913 = vmatpush3.bf16.msra.mxu0 %v1910_v54 }
 0x339   :  { %1915 = vmatprep.subr.bf16.mxu0 %v1914_v57 }
 0x33b   :  { %1885 = vmatpush3.bf16.msra.mxu1 %v1882_v33 }
 0x33c   :  { %1887 = vmatprep.subr.bf16.mxu1 %v1886_v36  ;;  %1917 = vmatpush3.bf16.msra.mxu0 %v1914_v57 }
 0x33d   :  { %1919 = vmatprep.subr.bf16.mxu0 %v1918_v0 }
 0x33f   :  { %1889 = vmatpush3.bf16.msra.mxu1 %v1886_v36 }
 0x340   :  { %1891 = vmatprep.subr.bf16.mxu1 %v1890_v39  ;;  %1921 = vmatpush3.bf16.msra.mxu0 %v1918_v0 }
 0x341   :  { %1923 = vmatprep.subr.bf16.mxu0 %v1922_v4 }
 0x343   :  { %1893 = vmatpush3.bf16.msra.mxu1 %v1890_v39 }
 0x344   :  { %1895 = vmatprep.subr.bf16.mxu1 %v1894_v42  ;;  %1925 = vmatpush3.bf16.msra.mxu0 %v1922_v4 }
 0x345   :  { %1927 = vmatprep.subr.bf16.mxu0 %v1926_v8 }
 0x347   :  { %1897 = vmatpush3.bf16.msra.mxu1 %v1894_v42 }
 0x348   :  { %1899 = vmatprep.subr.bf16.mxu1 %v1898_v45  ;;  %1929 = vmatpush3.bf16.msra.mxu0 %v1926_v8 }
 0x349   :  { %1931 = vmatprep.subr.bf16.mxu0 %v1930_v61 }
 0x34b   :  { %1901 = vmatpush3.bf16.msra.mxu1 %v1898_v45 }
 0x34c   :  { %1934 = vmatprep.subr.bf16.mxu1 %v2207_v14  ;;  %1933 = vmatpush3.bf16.msra.mxu0 %v1930_v61 }
 0x401   :  { %v520_v9 = vpop.f32.mrb[4].mxu1 }
 0x402   :  { %v1616_v10 = vpop.f32.mrb[8].mxu0  ;;  %524 = vst [vmem:[#allocation12] sm:$0x3] %v520_v9  ;;  %v1609_v11 = vpop.f32.mrb[5].mxu1 }
 0x403   :  { %v596_v12 = vpop.f32.mrb[9].mxu0 }
 0x404   :  { %v1617_v13 = vpop.f32.mrb[10].mxu0  ;;  %1650 = vmatprep.mubr.f32.mxu1 %v596_v12 }
 0x405   :  { %v599_v18 = vpop.f32.mrb[11].mxu0 }
 0x406   :  { %1651 = vmatmul.mubr.f32.vlgmr.msra.gmra.mrb[6].mxu1 %v599_v18 }
 0x407   :  { %1653 = vmatprep.mubr.f32.mxu1 %v1616_v10 }
 0x40a   :  { %1654 = vmatmul.mubr.f32.gmra.mrb[8].mxu1 %v1617_v13 }
 0x40b   :  { %1702 = vmatprep.mubr.msk.f32.mxu1 %vm2208_vm1, %v2209_v16 }
 0x4d9   :  { %v1652_v63 = vpop.f32.mrb[6].mxu1 }
 0x4da   :  { %v687_v23 = vadd.f32 %v1652_v63, %v614_v22  ;;  %v681_v24 = vpop.f32.mrb[7].mxu1 }
 0x4db   :  { %v682_v25 = vadd.f32 %v681_v24, %v614_v22 }
 0x4dc   :  { %v701_v29 = vmax.f32 %v687_v23, 0.0 }
 0x4dd   :  { %v700_v27 = vmax.f32 %v682_v25, 0.0  ;;  %v1655_v28 = vpop.f32.mrb[8].mxu1 }
 0x4de   :  { %v697_v30 = vadd.f32 %v1655_v28, %v614_v22  ;;  %v691_v31 = vpop.f32.mrb[9].mxu1 }
 0x4df   :  { %v692_v32 = vadd.f32 %v691_v31, %v614_v22  ;;  %1688 = vmatprep.mubr.f32.mxu0 %v700_v27 }
 0x4e0   :  { %1689 = vmatmul.mubr.f32.vlgmr.msra.gmra.mrb[12].mxu0 %v701_v29  ;;  %v703_v34 = vmax.f32 %v697_v30, 0.0 }
 0x4e1   :  { %v702_v33 = vmax.f32 %v692_v32, 0.0 }
 0x4e3   :  { %1691 = vmatprep.mubr.f32.mxu0 %v702_v33 }
 0x4e4   :  { %1692 = vmatmul.mubr.f32.gmra.mrb[14].mxu0 %v703_v34 }
 0x4e5   :  { %1709 = vmatprep.mubr.msk.bf16.mxu0 %vm154_vm0, %v2331_v6 }
 0x5b3   :  { %v1690_v36 = vpop.f32.mrb[12].mxu0 }
 0x5b4   :  { %v780_v37 = vadd.f32 %v1690_v36, %v707_v35  ;;  %v774_v38 = vpop.f32.mrb[13].mxu0 }
 0x5b5   :  { %v775_v39 = vadd.f32 %v774_v38, %v707_v35  ;;  %v924_v38 = vld [vmem:[#allocation8 + $0x80] sm:$0xff] }
 0x5b6   :  { %v794_v40 = vmax.f32 %v780_v37, 0.0 }
 0x5b7   :  { %v793_v41 = vmax.f32 %v775_v39, 0.0  ;;  %v1693_v42 = vpop.f32.mrb[14].mxu0  ;;  %v925_v39 = vld [vmem:[#allocation8 + $0x88] sm:$0xff] }
 0x5b8   :  { %v807_v43 = vmul.f32 %v794_v40, %v794_v40  ;;  %v790_v44 = vadd.f32 %v1693_v42, %v707_v35  ;;  %v784_v45 = vpop.f32.mrb[15].mxu0 }
 0x5b9   :  { %v797_v46 = vadd.f32 %v794_v40, %v793_v41  ;;  %v806_v47 = vmul.f32 %v793_v41, %v793_v41  ;;  %v785_v48 = vadd.f32 %v784_v45, %v707_v35 }
 0x5ba   :  { %v796_v50 = vmax.f32 %v790_v44, 0.0  ;;  %v929_v44 = vld [vmem:[#allocation8 + $0xa8] sm:$0xff] }
 0x5bb   :  { %v810_v49 = vadd.f32 %v807_v43, %v806_v47  ;;  %v795_v51 = vmax.f32 %v785_v48, 0.0  ;;  %v928_v43 = vld [vmem:[#allocation8 + $0xa0] sm:$0xff]  ;;  %v931_v47 = vld [vmem:[#allocation8 + $0xb8] sm:$0xff] }
 0x5bc   :  { %v809_v53 = vmul.f32 %v796_v50, %v796_v50  ;;  %v1948_v45 = vpack.c.bf16 %v929_v44, %v928_v43 }
 0x5bd   :  { %v798_v6 = vadd.f32 %v797_v46, %v795_v51  ;;  %v808_v52 = vmul.f32 %v795_v51, %v795_v51  ;;  %v930_v46 = vld [vmem:[#allocation8 + $0xb0] sm:$0xff] }
 0x5be   :  { %v1952_v48 = vpack.c.bf16 %v931_v47, %v930_v46 }
 0x5bf   :  { %v799_v54 = vadd.f32 %v798_v6, %v796_v50  ;;  %v811_v55 = vadd.f32 %v810_v49, %v808_v52  ;;  %v932_v49 = vld [vmem:[#allocation8 + $0xc0] sm:$0xff]  ;;  %v934_v6 = vld [vmem:[#allocation8 + $0xd0] sm:$0xff]  ;;  %v935_v52 = vld [vmem:[#allocation8 + $0xd8] sm:$0xff] }
 0x5c1   :  { %v800_v56 = vrot.slane %v799_v54, 4  ;;  %v812_v57 = vadd.f32 %v811_v55, %v809_v53  ;;  %v1960_v53 = vpack.c.bf16 %v935_v52, %v934_v6 }
 0x5c3   :  { %v801_v58 = vadd.f32 %v800_v56, %v799_v54  ;;  %v813_v60 = vrot.slane %v812_v57, 4  ;;  %v936_v54 = vld [vmem:[#allocation8 + $0xe0] sm:$0xff]  ;;  %v938_v56 = vld [vmem:[#allocation8 + $0xf0] sm:$0xff] }
 0x5c5   :  { %v802_v0 = vrot.slane %v801_v58, 2  ;;  %v814_v1 = vadd.f32 %v813_v60, %v812_v57  ;;  %v939_v57 = vld [vmem:[#allocation8 + $0xf8] sm:$0xff]  ;;  %v941_v60 = vld [vmem:[#allocation10 + $0x100] sm:$0xff] }
 0x5c7   :  { %v803_v2 = vadd.f32 %v802_v0, %v801_v58  ;;  %v815_v4 = vrot.slane %v814_v1, 2  ;;  %v1968_v58 = vpack.c.bf16 %v939_v57, %v938_v56  ;;  %v942_v0 = vld [vmem:[#allocation10 + $0x108] sm:$0xff] }
 0x5c9   :  { %v804_v5 = vrot.slane %v803_v2, 1  ;;  %v816_v7 = vadd.f32 %v815_v4, %v814_v1  ;;  %v943_v1 = vld [vmem:[#allocation10 + $0x110] sm:$0xff]  ;;  %v944_v4 = vld [vmem:[#allocation10 + $0x118] sm:$0xff] }
 0x5cb   :  { %v805_v8 = vadd.f32 %v804_v5, %v803_v2  ;;  %v817_v9 = vrot.slane %v816_v7, 1  ;;  %v1972_v2 = vpack.c.bf16 %v942_v0, %v941_v60  ;;  %v1976_v5 = vpack.c.bf16 %v944_v4, %v943_v1 }
 0x5cd   :  { %v818_v10 = vadd.f32 %v817_v9, %v816_v7  ;;  %v819_v11 = vmul.f32 0.03125, %v805_v8  ;;  %v945_v7 = vld [vmem:[#allocation10 + $0x120] sm:$0xff]  ;;  %v946_v8 = vld [vmem:[#allocation10 + $0x128] sm:$0xff] }
 0x5ce   :  { %v1980_v9 = vpack.c.bf16 %v946_v8, %v945_v7 }
 0x5cf   :  { %v820_v12 = vmul.f32 0.03125, %v818_v10  ;;  %v821_v13 = vmul.f32 %v819_v11, %v819_v11  ;;  %v947_v10 = vld [vmem:[#allocation10 + $0x130] sm:$0xff] }
 0x5d1   :  { %v822_v18 = vsub.f32 %v820_v12, %v821_v13  ;;  %v949_v13 = vld [vmem:[#allocation10 + $0x140] sm:$0xff] }
 0x5d3   :  { %v823_v19 = vmax.f32 %v822_v18, 0.0  ;;  %v950_v18 = vld [vmem:[#allocation10 + $0x148] sm:$0xff] }
 0x5d5   :  { %v824_v20 = vadd.f32 1e-05, %v823_v19  ;;  %v1988_v19 = vpack.c.bf16 %v950_v18, %v949_v13 }
 0x5d7   :  { %2030 = vrsqrt.f32 %v824_v20  ;;  %v951_v20 = vld [vmem:[#allocation10 + $0x150] sm:$0xff] }
 0x5e1   :  { %v2031_v61 = vpop.eup %2030 }
 0x5e2   :  { %v826_v22 = vmul.f32 %v2031_v61, %v2387_v21  ;;  %v952_v61 = vld [vmem:[#allocation10 + $0x158] sm:$0xff] }
 0x5e4   :  { %v827_v63 = vmul.f32 %v826_v22, %v819_v11  ;;  %v835_v23 = vrot.slane %v826_v22, %v2362_v59  ;;  %v948_v11 = vld [vmem:[#allocation10 + $0x138] sm:$0xff]  ;;  %v1992_v22 = vpack.c.bf16 %v952_v61, %v951_v20 }
 0x5e5   :  { %v1984_v12 = vpack.c.bf16 %v948_v11, %v947_v10 }
 0x5e6   :  { %v829_v24 = vrot.slane %v827_v63, 7  ;;  %v838_v25 = vmul.f32 %v835_v23, %v795_v51  ;;  %v836_v27 = vmul.f32 %v835_v23, %v793_v41  ;;  %v837_v28 = vmul.f32 %v835_v23, %v794_v40  ;;  %v926_v40 = vld [vmem:[#allocation8 + $0x90] sm:$0xff]  ;;  %v927_v41 = vld [vmem:[#allocation8 + $0x98] sm:$0xff]  ;;  %v953_v63 = vld [vmem:[#allocation10 + $0x160] sm:$0xff] }
 0x5e7   :  { %v839_v29 = vmul.f32 %v835_v23, %v796_v50  ;;  %v1944_v42 = vpack.c.bf16 %v927_v41, %v926_v40  ;;  %v933_v50 = vld [vmem:[#allocation8 + $0xc8] sm:$0xff] }
 0x5e8   :  { %v831_v30 = vsub.f32 %v2387_v21, %v829_v24  ;;  %v1940_v21 = vpack.c.bf16 %v925_v39, %v924_v38  ;;  %v1956_v51 = vpack.c.bf16 %v933_v50, %v932_v49  ;;  %v954_v23 = vld [vmem:[#allocation10 + $0x168] sm:$0xff] }
 0x5e9   :  { %v1996_v24 = vpack.c.bf16 %v954_v23, %v953_v63 }
 0x5ea   :  { %v843_v31 = vrot.slane %v831_v30, %v2367_v3 }
 0x5ec   :  { %v844_v32 = vadd.f32 %v843_v31, %v836_v27  ;;  %v845_v33 = vadd.f32 %v843_v31, %v837_v28  ;;  %v846_v34 = vadd.f32 %v843_v31, %v838_v25  ;;  %v847_v35 = vadd.f32 %v843_v31, %v839_v29 }
 0x5ee   :  { %848 = vst [vmem:[#allocation11 + $0x8] sm:$0xff] %v844_v32  ;;  %849 = vst [vmem:[#allocation11 + $0x20] sm:$0xff] %v845_v33  ;;  %v1935_v36 = vpack.c.bf16 %v845_v33, %v844_v32  ;;  %v1938_v37 = vpack.c.bf16 %v847_v35, %v846_v34  ;;  %v955_v32 = vld [vmem:[#allocation10 + $0x170] sm:$0xff]  ;;  %v956_v33 = vld [vmem:[#allocation10 + $0x178] sm:$0xff] }
 0x5ef   :  { %850 = vst [vmem:[#allocation11 + $0x38] sm:$0xff] %v846_v34  ;;  %851 = vst [vmem:[#allocation11 + $0x50] sm:$0xff] %v847_v35  ;;  %v2000_v34 = vpack.c.bf16 %v956_v33, %v955_v32  ;;  %v2410_v35 = vld [vmem:[%s2453_s6 + $0x8] sm:$0xf]  ;;  %s2210_s6 = smov [#allocation11]  }
 0x5f0   :  { %1936 = vmatpush3.bf16.msra.mxu1 %v1935_v36  ;;  %1705 = vmatprep.subr.bf16.mxu0 %v1935_v36  ;;  %v1106_v47 = vrot.slane %v2410_v35, %v2357_v17  ;;  %s1327_s29 = sshll.u32 %s2210_s6, 4  ;;  %s1328_s29 = int_to_ptr.vmem [resolvable:$true] %s1327_s29 }
 0x5f1   :  { %1706 = vmatpush3.bf16.msra.mxu0 %v1935_v36  ;;  %1937 = vmatprep.subr.bf16.mxu1 %v2207_v14  ;;  %v1013_v36 = vrot.slane %v2410_v35, %v2342_v62  ;;  %s2144_s30 = scalar_lea.vmem %s1328_s29, 1536  ;;  %p2149_p13 = scmp.lt.s32.totalorder %s1328_s29, %s1328_s29 }
 0x5f2   :  { %1707 = vmatprep.subr.bf16.mxu0 %v1938_v37  ;;  %p2145_p12 = scmp.ne.s32.totalorder %s1328_s29, %s2144_s30  ;;  %p2150_p0 = scmp.lt.s32.totalorder %s2144_s30, %s2144_s30 }
 0x5f4   :  { %1939 = vmatpush3.bf16.msra.mxu1 %v1938_v37  ;;  %p2151_p1 = por %p2150_p0, %p2149_p13 }
 0x5f5   :  { %1708 = vmatpush3.bf16.msra.mxu0 %v1938_v37  ;;  %1941 = vmatprep.subr.bf16.mxu1 %v1940_v21 }
 0x5f6   :  { %1973 = vmatprep.subr.bf16.mxu0 %v1972_v2  ;;  %p2152_p2 = pnand %p2151_p1, %p2145_p12 }
 0x5f7   :  { %1703 = vmatmul.mubr.msk.f32.vlgmr.msra.gmra.mrb[10].mxu1 %vm154_vm0, %v2375_v26 }
 0x5f8   :  { %1710 = vmatmul.mubr.msk.bf16.vlgmr.msra.gmra.mrb[16].mxu0 %vm154_vm0, %v2335_v15  ;;  %1943 = vmatpush3.bf16.msra.mxu1 %v1940_v21  ;;  %v937_v15 = vld [vmem:[#allocation8 + $0xe8] sm:$0xff] }
 0x5f9   :  { %1945 = vmatprep.subr.bf16.mxu1 %v1944_v42  ;;  %v1964_v55 = vpack.c.bf16 %v937_v15, %v936_v54  ;;  %1975 = vmatpush3.bf16.msra.mxu0 %v1972_v2 }
 0x5fa   :  { %1977 = vmatprep.subr.bf16.mxu0 %v1976_v5 }
 0x5fc   :  { %1947 = vmatpush3.bf16.msra.mxu1 %v1944_v42 }
 0x5fd   :  { %1949 = vmatprep.subr.bf16.mxu1 %v1948_v45  ;;  %1979 = vmatpush3.bf16.msra.mxu0 %v1976_v5 }
 0x5fe   :  { %1981 = vmatprep.subr.bf16.mxu0 %v1980_v9 }
 0x600   :  { %1951 = vmatpush3.bf16.msra.mxu1 %v1948_v45 }
 0x601   :  { %1953 = vmatprep.subr.bf16.mxu1 %v1952_v48  ;;  %1983 = vmatpush3.bf16.msra.mxu0 %v1980_v9 }
 0x602   :  { %1985 = vmatprep.subr.bf16.mxu0 %v1984_v12 }
 0x604   :  { %1955 = vmatpush3.bf16.msra.mxu1 %v1952_v48 }
 0x605   :  { %1957 = vmatprep.subr.bf16.mxu1 %v1956_v51  ;;  %1987 = vmatpush3.bf16.msra.mxu0 %v1984_v12 }
 0x606   :  { %1989 = vmatprep.subr.bf16.mxu0 %v1988_v19 }
 0x608   :  { %1959 = vmatpush3.bf16.msra.mxu1 %v1956_v51 }
 0x609   :  { %1961 = vmatprep.subr.bf16.mxu1 %v1960_v53  ;;  %1991 = vmatpush3.bf16.msra.mxu0 %v1988_v19 }
 0x60a   :  { %1993 = vmatprep.subr.bf16.mxu0 %v1992_v22 }
 0x60c   :  { %1963 = vmatpush3.bf16.msra.mxu1 %v1960_v53 }
 0x60d   :  { %1965 = vmatprep.subr.bf16.mxu1 %v1964_v55  ;;  %1995 = vmatpush3.bf16.msra.mxu0 %v1992_v22 }
 0x60e   :  { %1997 = vmatprep.subr.bf16.mxu0 %v1996_v24 }
 0x610   :  { %1967 = vmatpush3.bf16.msra.mxu1 %v1964_v55 }
 0x611   :  { %1969 = vmatprep.subr.bf16.mxu1 %v1968_v58  ;;  %1999 = vmatpush3.bf16.msra.mxu0 %v1996_v24 }
 0x612   :  { %2001 = vmatprep.subr.bf16.mxu0 %v2000_v34 }
 0x614   :  { %1971 = vmatpush3.bf16.msra.mxu1 %v1968_v58 }
 0x615   :  { %2004 = vmatprep.subr.bf16.mxu1 %v2207_v14  ;;  %2003 = vmatpush3.bf16.msra.mxu0 %v2000_v34 }
 0x6ca   :  { %v918_v25 = vpop.f32.mrb[10].mxu1 }
 0x6cb   :  { %v1711_v27 = vpop.f32.mrb[16].mxu0  ;;  %922 = vst [vmem:[#allocation12 + $0x2] sm:$0x3] %v918_v25  ;;  %v1704_v28 = vpop.f32.mrb[11].mxu1 }
 0x6cc   :  { %v995_v29 = vpop.f32.mrb[17].mxu0 }
 0x6cd   :  { %v1712_v30 = vpop.f32.mrb[18].mxu0  ;;  %1745 = vmatprep.mubr.f32.mxu1 %v995_v29 }
 0x6ce   :  { %v998_v31 = vpop.f32.mrb[19].mxu0 }
 0x6cf   :  { %1746 = vmatmul.mubr.f32.vlgmr.msra.gmra.mrb[12].mxu1 %v998_v31 }
 0x6d0   :  { %1748 = vmatprep.mubr.f32.mxu1 %v1711_v27 }
 0x6d3   :  { %1749 = vmatmul.mubr.f32.gmra.mrb[14].mxu1 %v1712_v30 }
 0x6d4   :  { %1797 = vmatprep.mubr.msk.f32.mxu1 %vm2208_vm1, %v2209_v16 }
 0x7a2   :  { %v1747_v37 = vpop.f32.mrb[12].mxu1 }
 0x7a3   :  { %v1086_v38 = vadd.f32 %v1747_v37, %v1013_v36  ;;  %v1080_v39 = vpop.f32.mrb[13].mxu1 }
 0x7a4   :  { %v1081_v21 = vadd.f32 %v1080_v39, %v1013_v36 }
 0x7a5   :  { %v1100_v16 = vmax.f32 %v1086_v38, 0.0 }
 0x7a6   :  { %v1099_v40 = vmax.f32 %v1081_v21, 0.0  ;;  %v1750_v41 = vpop.f32.mrb[14].mxu1 }
 0x7a7   :  { %v1096_v42 = vadd.f32 %v1750_v41, %v1013_v36  ;;  %v1090_v43 = vpop.f32.mrb[15].mxu1 }
 0x7a8   :  { %v1091_v44 = vadd.f32 %v1090_v43, %v1013_v36  ;;  %1783 = vmatprep.mubr.f32.mxu0 %v1099_v40 }
 0x7a9   :  { %1784 = vmatmul.mubr.f32.vlgmr.msra.gmra.mrb[20].mxu0 %v1100_v16  ;;  %v1102_v46 = vmax.f32 %v1096_v42, 0.0 }
 0x7aa   :  { %v1101_v45 = vmax.f32 %v1091_v44, 0.0 }
 0x7ac   :  { %1786 = vmatprep.mubr.f32.mxu0 %v1101_v45 }
 0x7ad   :  { %1787 = vmatmul.mubr.f32.gmra.mrb[22].mxu0 %v1102_v46 }
 0x87c   :  { %v1785_v62 = vpop.f32.mrb[20].mxu0 }
 0x87d   :  { %v1179_v48 = vadd.f32 %v1785_v62, %v1106_v47  ;;  %v1173_v49 = vpop.f32.mrb[21].mxu0 }
 0x87e   :  { %v1174_v50 = vadd.f32 %v1173_v49, %v1106_v47 }
 0x87f   :  { %v1193_v51 = vmax.f32 %v1179_v48, 0.0 }
 0x880   :  { %v1192_v6 = vmax.f32 %v1174_v50, 0.0  ;;  %v1788_v52 = vpop.f32.mrb[22].mxu0 }
 0x881   :  { %v1206_v53 = vmul.f32 %v1193_v51, %v1193_v51  ;;  %v1189_v54 = vadd.f32 %v1788_v52, %v1106_v47  ;;  %v1183_v15 = vpop.f32.mrb[23].mxu0 }
 0x882   :  { %v1196_v55 = vadd.f32 %v1193_v51, %v1192_v6  ;;  %v1205_v56 = vmul.f32 %v1192_v6, %v1192_v6  ;;  %v1184_v57 = vadd.f32 %v1183_v15, %v1106_v47 }
 0x883   :  { %v1195_v60 = vmax.f32 %v1189_v54, 0.0 }
 0x884   :  { %v1209_v58 = vadd.f32 %v1206_v53, %v1205_v56  ;;  %v1194_v0 = vmax.f32 %v1184_v57, 0.0 }
 0x885   :  { %v1208_v4 = vmul.f32 %v1195_v60, %v1195_v60 }
 0x886   :  { %v1197_v1 = vadd.f32 %v1196_v55, %v1194_v0  ;;  %v1207_v2 = vmul.f32 %v1194_v0, %v1194_v0 }
 0x888   :  { %v1198_v17 = vadd.f32 %v1197_v1, %v1195_v60  ;;  %v1210_v5 = vadd.f32 %v1209_v58, %v1207_v2 }
 0x88a   :  { %v1199_v7 = vrot.slane %v1198_v17, 4  ;;  %v1211_v8 = vadd.f32 %v1210_v5, %v1208_v4 }
 0x88c   :  { %v1200_v9 = vadd.f32 %v1199_v7, %v1198_v17  ;;  %v1212_v10 = vrot.slane %v1211_v8, 4 }
 0x88e   :  { %v1201_v11 = vrot.slane %v1200_v9, 2  ;;  %v1213_v12 = vadd.f32 %v1212_v10, %v1211_v8 }
 0x890   :  { %v1202_v13 = vadd.f32 %v1201_v11, %v1200_v9  ;;  %v1214_v18 = vrot.slane %v1213_v12, 2 }
 0x892   :  { %v1203_v19 = vrot.slane %v1202_v13, 1  ;;  %v1215_v20 = vadd.f32 %v1214_v18, %v1213_v12 }
 0x894   :  { %v1204_v61 = vadd.f32 %v1203_v19, %v1202_v13  ;;  %v1216_v22 = vrot.slane %v1215_v20, 1 }
 0x896   :  { %v1217_v63 = vadd.f32 %v1216_v22, %v1215_v20  ;;  %v1218_v23 = vmul.f32 0.03125, %v1204_v61 }
 0x898   :  { %v1219_v24 = vmul.f32 0.03125, %v1217_v63  ;;  %v1220_v25 = vmul.f32 %v1218_v23, %v1218_v23 }
 0x89a   :  { %v1221_v27 = vsub.f32 %v1219_v24, %v1220_v25 }
 0x89c   :  { %v1222_v28 = vmax.f32 %v1221_v27, 0.0 }
 0x89e   :  { %v1223_v29 = vadd.f32 1e-05, %v1222_v28 }
 0x8a0   :  { %2032 = vrsqrt.f32 %v1223_v29 }
 0x8aa   :  { %v2033_v30 = vpop.eup %2032 }
 0x8ab   :  { %v1225_v31 = vmul.f32 %v2033_v30, %v2410_v35 }
 0x8ad   :  { %v1226_v32 = vmul.f32 %v1225_v31, %v1218_v23  ;;  %v1234_v33 = vrot.slane %v1225_v31, %v2362_v59 }
 0x8af   :  { %v1228_v34 = vrot.slane %v1226_v32, 7  ;;  %v1237_v36 = vmul.f32 %v1234_v33, %v1194_v0  ;;  %v1235_v37 = vmul.f32 %v1234_v33, %v1192_v6  ;;  %v1236_v38 = vmul.f32 %v1234_v33, %v1193_v51 }
 0x8b0   :  { %v1238_v39 = vmul.f32 %v1234_v33, %v1195_v60 }
 0x8b1   :  { %v1230_v21 = vsub.f32 %v2410_v35, %v1228_v34 }
 0x8b3   :  { %v1242_v40 = vrot.slane %v1230_v21, %v2367_v3 }
 0x8b5   :  { %v1245_v41 = vadd.f32 %v1242_v40, %v1237_v36  ;;  %v1243_v16 = vadd.f32 %v1242_v40, %v1235_v37  ;;  %v1244_v42 = vadd.f32 %v1242_v40, %v1236_v38  ;;  %v1246_v43 = vadd.f32 %v1242_v40, %v1238_v39 }
 0x8b7   :  { %1249 = vst [vmem:[#allocation11 + $0x40] sm:$0xff] %v1245_v41  ;;  %1247 = vst [vmem:[#allocation11 + $0x10] sm:$0xff] %v1243_v16  ;;  %v2005_v44 = vpack.c.bf16 %v1244_v42, %v1243_v16  ;;  %v2008_v45 = vpack.c.bf16 %v1246_v43, %v1245_v41 }
 0x8b8   :  { %1248 = vst [vmem:[#allocation11 + $0x28] sm:$0xff] %v1244_v42  ;;  %1250 = vst [vmem:[#allocation11 + $0x58] sm:$0xff] %v1246_v43 }
 0x8b9   :  { %2006 = vmatpush3.bf16.msra.mxu1 %v2005_v44 }
 0x8ba   :  { %2007 = vmatprep.subr.bf16.mxu1 %v2207_v14 }
 0x8bd   :  { %2009 = vmatpush3.bf16.msra.mxu1 %v2008_v45 }
 0x8c0   :  { %1798 = vmatmul.mubr.msk.f32.vlgmr.msra.gmra.mrb[16].mxu1 %vm154_vm0, %v2375_v26 }
 0x8c1   :  { %2155 = shalt.err (!%p2152_p2)
}
 0x8c2   :  { %s2156_s9 = scalar_lea.hbm %s2454_s7, 1536 }
 0x8c3   :  { %p2157_p3 = scmp.ne.s32.totalorder %s2454_s7, %s2156_s9  ;;  %p2160_p4 = scmp.lt.u32.totalorder %s2156_s9, %s2454_s7 }
 0x8c5   :  { %p2162_p5 = pnand %p2160_p4, %p2157_p3 }
 0x8c7   :  { %2165 = shalt.err (!%p2162_p5)
}
 0x8c8   :  { %s2211_s12 = smov 384   ;;  %s2212_s13 = smov 24  }
 0x8c9   :  { %1333 = dma.vmem_to_hbm [thread:$0]  %s1328_s29, 1536, %s2454_s7, [#allocation4], %s2211_s12, %s2211_s12, %s2212_s13  }
 0x8ca   :  { %s2213_s18 = smov [#allocation12]  }
 0x8cb   :  { %s1340_s19 = sshll.u32 %s2213_s18, 4  ;;  %s1341_s19 = int_to_ptr.vmem [resolvable:$true] %s1340_s19 }
 0x8cc   :  { %s2166_s4 = scalar_lea.vmem %s1341_s19, 96  ;;  %p2171_p7 = scmp.lt.s32.totalorder %s1341_s19, %s1341_s19 }
 0x8cd   :  { %p2167_p6 = scmp.ne.s32.totalorder %s1341_s19, %s2166_s4  ;;  %p2172_p8 = scmp.lt.s32.totalorder %s2166_s4, %s2166_s4 }
 0x8cf   :  { %p2173_p9 = por %p2172_p8, %p2171_p7 }
 0x8d1   :  { %p2174_p10 = pnand %p2173_p9, %p2167_p6 }
 0x993   :  { %v1317_v14 = vpop.f32.mrb[16].mxu1 }
 0x994   :  { %1321 = vst [vmem:[#allocation12 + $0x4] sm:$0x3] %v1317_v14  ;;  %v1799_v59 = vpop.f32.mrb[17].mxu1 }
 0x995   :  { %2177 = shalt.err (!%p2174_p10)
}
 0x996   :  { %s2178_s3 = scalar_lea.hbm %s2455_s8, 96 }
 0x997   :  { %p2179_p11 = scmp.ne.s32.totalorder %s2455_s8, %s2178_s3  ;;  %p2182_p12 = scmp.lt.u32.totalorder %s2178_s3, %s2455_s8 }
 0x999   :  { %p2184_p13 = pnand %p2182_p12, %p2179_p11 }
 0x99b   :  { %2187 = shalt.err (!%p2184_p13)
}
 0x99c   :  { %1343 = dma.vmem_to_hbm [thread:$0]  %s1341_s19, 96, %s2455_s8, [#allocation13]  }
 0x99d   :  { %2194 = dma.done.wait [#allocation4], 1536  }
 0x99e   :  { %2195 = vsyncadd [#allocation4], 4294965760 }
 0x99f   :  { %2196 = dma.done.wait [#allocation13], 96  }
 0x9a0   :  { %2197 = vsyncadd [#allocation13], 4294967200 }
 0x9a1   :  { %1350 = vsyncpa [#allocation3], 1 }
 0x9a2   :  { %1351 = vsyncpa [#allocation6], 1 }
 0x9a3   :  { %1352 = vsyncpa [#allocation9], 1 }
 0x9a4   :  { %1353 = vsyncpa [#allocation4], 1 }
 0x9a5   :  { %1354 = vsyncpa [#allocation13], 1 }

</bundles_post_ra>
